<compile_context>
chip_gen: v7x
topology: tpu7x:2x2x1
jax: 0.10.0
libtpu: 0.0.40
codegen_flags: <defaults>
</compile_context>

<pallas_src>
import math

import jax
import jax.numpy as jnp
from jax.experimental import pallas as pl
from jax.experimental.pallas import tpu as pltpu


# ---------------------------------------------------------------------------
# Pallas kernel (one grid step == one WaveRNN timestep)
# ---------------------------------------------------------------------------
def wavernn_seq_kernel(
    yc_ref,      # [1, B, 12] f32   (prev_y | current_coarse) for this step
    h0_ref,      # [B, H]     f32   initial hidden (read only at t == 0)
    WR_ref,      # [H, 3H]    bf16  R weight (columns: R_u | R_r | R_e)
    WI_ref,      # [12, 3H]   bf16  fused I_coarse/I_fine weight (cols: I_u | I_r | I_e,
                 #                  each gate block already in [coarse|fine] order)
    bg_ref,      # [1, 3H]    f32   (bias_u | bias_r | bias_e)
    O1w_ref,     # [S, S]     bf16
    O1b_ref,     # [1, S]     f32
    O3w_ref,     # [S, S]     bf16
    O3b_ref,     # [1, S]     f32
    Wc_ref,      # [S, 4Q]    bf16  4 coarse heads fused along N
    bc_ref,      # [1, 4Q]    f32
    Wf_ref,      # [S, 4Q]    bf16  4 fine heads fused along N
    bf_ref,      # [1, 4Q]    f32
    c_ref,       # out: [1, 4B, Q] f32
    f_ref,       # out: [1, 4B, Q] f32
    hid_ref,     # out: [B, H]     f32 (final hidden)
    h_scr,       # scratch: [B, H] f32 (carried hidden, VMEM-resident across steps)
):
    t = pl.program_id(0)
    B, H = h0_ref.shape
    S = H // 2
    Q = c_ref.shape[2]

    # Initialize the carried hidden state from the HBM input only on step 0.
    @pl.when(t == 0)
    def _():
        h_scr[...] = h0_ref[...]

    h = h_scr[...]                     # [B, H] f32
    yc = yc_ref[0]                     # [B, 12] f32

    # --- Gate projections: two MXU matmuls (bf16 x bf16 -> f32 accumulate) ---
    gates_R = jnp.dot(h.astype(jnp.bfloat16), WR_ref[...],
                      preferred_element_type=jnp.float32)                 # [B, 3H]
    gates_I = jnp.dot(yc.astype(jnp.bfloat16), WI_ref[...],
                      preferred_element_type=jnp.float32) + bg_ref[...]   # [B, 3H]

    u = jax.nn.sigmoid(gates_R[:, 0:H] + gates_I[:, 0:H])
    r = jax.nn.sigmoid(gates_R[:, H:2 * H] + gates_I[:, H:2 * H])
    # note: only R_e is scaled by r; I_e + bias_e is not (matches the module).
    e = jnp.tanh(r * gates_R[:, 2 * H:3 * H] + gates_I[:, 2 * H:3 * H])

    hidden = u * h + (1.0 - u) * e
    h_scr[...] = hidden
    hid_ref[...] = hidden              # constant-index output block: written back at end

    hb = hidden.astype(jnp.bfloat16)
    out_c = jnp.maximum(
        jnp.dot(hb[:, :S], O1w_ref[...], preferred_element_type=jnp.float32)
        + O1b_ref[...], 0.0)
    out_f = jnp.maximum(
        jnp.dot(hb[:, S:], O3w_ref[...], preferred_element_type=jnp.float32)
        + O3b_ref[...], 0.0)

    # --- Fused output heads: 2 matmuls instead of 8 ---
    c_all = jnp.dot(out_c.astype(jnp.bfloat16), Wc_ref[...],
                    preferred_element_type=jnp.float32) + bc_ref[...]     # [B, 4Q]
    f_all = jnp.dot(out_f.astype(jnp.bfloat16), Wf_ref[...],
                    preferred_element_type=jnp.float32) + bf_ref[...]     # [B, 4Q]

    # Scatter the 4 heads onto the batch axis (torch.cat(..., dim=0) layout).
    # Lane offsets are multiples of Q (>=128), sublane offsets multiples of B=8.
    for i in range(4):
        c_ref[0, i * B:(i + 1) * B, :] = c_all[:, i * Q:(i + 1) * Q]
        f_ref[0, i * B:(i + 1) * B, :] = f_all[:, i * Q:(i + 1) * Q]


# ---------------------------------------------------------------------------
# Wrappers
# ---------------------------------------------------------------------------
def wavernn_sequence(prev_y_seq, current_coarse_seq, init_hidden, fused):
    """Run T WaveRNN steps with weights VMEM-resident and hidden carried in VMEM.

    prev_y_seq:          [T, B, 8]
    current_coarse_seq:  [T, B, 4]
    init_hidden:         [B, H]
    returns: c [T, 4B, Q], f [T, 4B, Q], final hidden [B, H]
    """
    T, B, _ = prev_y_seq.shape
    H = init_hidden.shape[1]
    S = H // 2
    Q = fused["bc_all"].shape[1] // 4

    # Pre-concatenate (prev_y | current_coarse) outside the kernel.
    yc_seq = jnp.concatenate(
        [prev_y_seq.astype(jnp.float32), current_coarse_seq.astype(jnp.float32)],
        axis=2)  # [T, B, 12]

    def const_spec(shape):
        # Whole-array block, constant index map -> DMA'd once, stays in VMEM.
        return pl.BlockSpec(shape, lambda t: tuple(0 for _ in shape))

    operands = (
        yc_seq,
        init_hidden,
        fused["W_R"], fused["W_I"], fused["b_gate"],
        fused["O1_w"], fused["O1_b"], fused["O3_w"], fused["O3_b"],
        fused["Wc_all"], fused["bc_all"], fused["Wf_all"], fused["bf_all"],
    )
    in_specs = [
        pl.BlockSpec((1, B, 12), lambda t: (t, 0, 0)),   # per-step inputs stream in
        const_spec((B, H)),                              # initial hidden
        const_spec((H, 3 * H)),
        const_spec((12, 3 * H)),
        const_spec((1, 3 * H)),
        const_spec((S, S)),
        const_spec((1, S)),
        const_spec((S, S)),
        const_spec((1, S)),
        const_spec((S, 4 * Q)),
        const_spec((1, 4 * Q)),
        const_spec((S, 4 * Q)),
        const_spec((1, 4 * Q)),
    ]
    out_specs = (
        pl.BlockSpec((1, 4 * B, Q), lambda t: (t, 0, 0)),
        pl.BlockSpec((1, 4 * B, Q), lambda t: (t, 0, 0)),
        pl.BlockSpec((B, H), lambda t: (0, 0)),
    )
    out_shape = (
        jax.ShapeDtypeStruct((T, 4 * B, Q), jnp.float32),
        jax.ShapeDtypeStruct((T, 4 * B, Q), jnp.float32),
        jax.ShapeDtypeStruct((B, H), jnp.float32),
    )

    return pl.pallas_call(
        wavernn_seq_kernel,
        grid=(T,),
        in_specs=in_specs,
        out_specs=out_specs,
        out_shape=out_shape,
        scratch_shapes=[pltpu.VMEM((B, H), jnp.float32)],
        compiler_params=pltpu.CompilerParams(
            dimension_semantics=("arbitrary",)),   # sequential recurrence over t
    )(*operands)


def wavernn_forward(prev_y, prev_hidden, current_coarse, fused):
    """Module-exact single step (T=1 special case of the sequence kernel)."""
    c, f, hidden = wavernn_sequence(prev_y[None], current_coarse[None],
                                    prev_hidden, fused)
    return c[0], f[0], hidden


# ---------------------------------------------------------------------------
# Parameter construction (PyTorch-style init) and weight fusion
# ---------------------------------------------------------------------------
def init_params(key, hidden_size, quantization):
    H, S, Q = hidden_size, hidden_size // 2, quantization

    def linear(key, fan_in, fan_out, bias):
        bound = 1.0 / math.sqrt(fan_in)          # PyTorch nn.Linear default init
        kw, kb = jax.random.split(key)
        w = jax.random.uniform(kw, (fan_in, fan_out), jnp.float32, -bound, bound)
        if not bias:
            return w, None
        b = jax.random.uniform(kb, (1, fan_out), jnp.float32, -bound, bound)
        return w, b

    keys = jax.random.split(key, 16)
    R_w, _ = linear(keys[0], H, 3 * H, bias=False)
    Ic_w, _ = linear(keys[1], 2 * 4, 3 * S, bias=False)
    If_w, _ = linear(keys[2], 3 * 4, 3 * S, bias=False)
    O1_w, O1_b = linear(keys[3], S, S, bias=True)
    O3_w, O3_b = linear(keys[4], S, S, bias=True)

    head_ws_c, head_bs_c, head_ws_f, head_bs_f = [], [], [], []
    for i in range(4):
        wc, bc = linear(keys[5 + 2 * i], S, Q, bias=True)   # {one..four}_O2
        wf, bf = linear(keys[6 + 2 * i], S, Q, bias=True)   # {one..four}_O4
        head_ws_c.append(wc); head_bs_c.append(bc.reshape(Q))
        head_ws_f.append(wf); head_bs_f.append(bf.reshape(Q))

    return {
        "R_w": R_w, "Ic_w": Ic_w, "If_w": If_w,
        "O1_w": O1_w, "O1_b": O1_b, "O3_w": O3_w, "O3_b": O3_b,
        "Wc": jnp.stack(head_ws_c, axis=0), "bc": jnp.stack(head_bs_c, axis=0),
        "Wf": jnp.stack(head_ws_f, axis=0), "bf": jnp.stack(head_bs_f, axis=0),
        "bias_u": jnp.zeros((1, H), jnp.float32),
        "bias_r": jnp.zeros((1, H), jnp.float32),
        "bias_e": jnp.zeros((1, H), jnp.float32),
    }


def fuse_params(p, hidden_size):
    """Build the fused, bf16-cast operands consumed by the kernel."""
    H, S = hidden_size, hidden_size // 2
    bf16 = jnp.bfloat16

    # Fused I weight [12, 3H]: per gate g, coarse half <- Ic_w (rows 0:8),
    # fine half <- If_w (rows 0:12).  Rows 8:12 of the coarse half stay zero.
    Ic = p["Ic_w"].astype(bf16)          # [8, 3S]
    If = p["If_w"].astype(bf16)          # [12, 3S]
    W_I = jnp.zeros((12, 3 * H), bf16)
    for g in range(3):
        W_I = W_I.at[0:8, g * H:g * H + S].set(Ic[:, g * S:(g + 1) * S])
        W_I = W_I.at[:, g * H + S:(g + 1) * H].set(If[:, g * S:(g + 1) * S])

    return {
        "W_R": p["R_w"].astype(bf16),                                    # [H, 3H]
        "W_I": W_I,                                                      # [12, 3H]
        "b_gate": jnp.concatenate([p["bias_u"], p["bias_r"], p["bias_e"]], axis=1),
        "O1_w": p["O1_w"].astype(bf16), "O1_b": p["O1_b"],
        "O3_w": p["O3_w"].astype(bf16), "O3_b": p["O3_b"],
        "Wc_all": jnp.concatenate(list(p["Wc"]), axis=1).astype(bf16),   # [S, 4Q]
        "bc_all": p["bc"].reshape(1, -1),                                # [1, 4Q]
        "Wf_all": jnp.concatenate(list(p["Wf"]), axis=1).astype(bf16),   # [S, 4Q]
        "bf_all": p["bf"].reshape(1, -1),                                # [1, 4Q]
    }


# ---------------------------------------------------------------------------
# Pure-JAX reference (mirrors the module; uses the same bf16-quantized weights
# and bf16 MXU matmuls so the comparison is tight).
# ---------------------------------------------------------------------------
def reference_forward(prev_y, prev_h, cur_c, p):
    bf16 = jnp.bfloat16

    def mm(x, w):
        return jnp.dot(x.astype(bf16), w.astype(bf16),
                       preferred_element_type=jnp.float32)

    H = prev_h.shape[1]
    S = H // 2
    Rh = mm(prev_h, p["R_w"])
    R_u, R_r, R_e = Rh[:, :H], Rh[:, H:2 * H], Rh[:, 2 * H:]
    cp = mm(prev_y, p["Ic_w"])
    fp = mm(jnp.concatenate([prev_y, cur_c], axis=1), p["If_w"])
    I_u = jnp.concatenate([cp[:, :S], fp[:, :S]], axis=1)
    I_r = jnp.concatenate([cp[:, S:2 * S], fp[:, S:2 * S]], axis=1)
    I_e = jnp.concatenate([cp[:, 2 * S:], fp[:, 2 * S:]], axis=1)
    u = jax.nn.sigmoid(R_u + I_u + p["bias_u"])
    r = jax.nn.sigmoid(R_r + I_r + p["bias_r"])
    e = jnp.tanh(r * R_e + I_e + p["bias_e"])
    hidden = u * prev_h + (1.0 - u) * e
    out_c = jax.nn.relu(mm(hidden[:, :S], p["O1_w"]) + p["O1_b"])
    out_f = jax.nn.relu(mm(hidden[:, S:], p["O3_w"]) + p["O3_b"])
    c = jnp.concatenate([mm(out_c, p["Wc"][i]) + p["bc"][i] for i in range(4)], axis=0)
    f = jnp.concatenate([mm(out_f, p["Wf"][i]) + p["bf"][i] for i in range(4)], axis=0)
    return c, f, hidden


if __name__ == "__main__":
    # Small, module-consistent shapes: batch=8, hidden=256 (split=128), quant=128, T=8.
    B, H, Q, T = 8, 256, 128, 8

    key = jax.random.PRNGKey(0)
    k_py, k_ph, k_cc, k_params, k_yseq, k_cseq = jax.random.split(key, 6)

    prev_y = jax.random.normal(k_py, (B, 8), jnp.float32)
    prev_hidden = jax.random.normal(k_ph, (B, H), jnp.float32)
    current_coarse = jax.random.normal(k_cc, (B, 4), jnp.float32)
    params = init_params(k_params, H, Q)
    fused = fuse_params(params, H)

    # --- single step (module-exact interface) ---
    c, f, hidden = wavernn_forward(prev_y, prev_hidden, current_coarse, fused)
    jax.block_until_ready((c, f, hidden))
    c_ref, f_ref, h_ref = reference_forward(prev_y, prev_hidden, current_coarse, params)
    assert c.shape == (4 * B, Q) and f.shape == (4 * B, Q) and hidden.shape == (B, H)
    assert jnp.allclose(c, c_ref, atol=1e-2, rtol=1e-2)
    assert jnp.allclose(f, f_ref, atol=1e-2, rtol=1e-2)
    assert jnp.allclose(hidden, h_ref, atol=1e-2, rtol=1e-2)

    # --- T-step sequence: weights stay VMEM-resident, hidden carried in VMEM ---
    y_seq = jax.random.normal(k_yseq, (T, B, 8), jnp.float32)
    cc_seq = jax.random.normal(k_cseq, (T, B, 4), jnp.float32)
    cs, fs, h_final = wavernn_sequence(y_seq, cc_seq, prev_hidden, fused)
    jax.block_until_ready((cs, fs, h_final))

    h_loop = prev_hidden
    for t in range(T):
        ct, ft, h_loop = reference_forward(y_seq[t], h_loop, cc_seq[t], params)
        assert jnp.allclose(cs[t], ct, atol=2e-2, rtol=2e-2)
        assert jnp.allclose(fs[t], ft, atol=2e-2, rtol=2e-2)
    assert jnp.allclose(h_final, h_loop, atol=2e-2, rtol=2e-2)

    print("KERNEL_OK")
</pallas_src>

<mosaic_0001>
module attributes {stable_mosaic.version = 11 : i64} {
  func.func @wavernn_seq_kernel(%arg0: i32, %arg1: memref<1x8x12xf32, #tpu.memory_space<vmem>>, %arg2: memref<8x256xf32, #tpu.memory_space<vmem>>, %arg3: memref<256x768xbf16, #tpu.memory_space<vmem>>, %arg4: memref<12x768xbf16, #tpu.memory_space<vmem>>, %arg5: memref<1x768xf32, #tpu.memory_space<vmem>>, %arg6: memref<128x128xbf16, #tpu.memory_space<vmem>>, %arg7: memref<1x128xf32, #tpu.memory_space<vmem>>, %arg8: memref<128x128xbf16, #tpu.memory_space<vmem>>, %arg9: memref<1x128xf32, #tpu.memory_space<vmem>>, %arg10: memref<128x512xbf16, #tpu.memory_space<vmem>>, %arg11: memref<1x512xf32, #tpu.memory_space<vmem>>, %arg12: memref<128x512xbf16, #tpu.memory_space<vmem>>, %arg13: memref<1x512xf32, #tpu.memory_space<vmem>>, %arg14: memref<1x32x128xf32, #tpu.memory_space<vmem>>, %arg15: memref<1x32x128xf32, #tpu.memory_space<vmem>>, %arg16: memref<8x256xf32, #tpu.memory_space<vmem>>, %arg17: memref<8x256xf32, #tpu.memory_space<vmem>>) attributes {dimension_semantics = [#tpu.dimension_semantics<arbitrary>], iteration_bounds = array<i64: 1>, scalar_prefetch = 0 : i64, scratch_operands = 1 : i64, tpu.core_type = #tpu.core_type<tc>, window_params = [{transform_indices = @transform_0, window_bounds = array<i64: 1, 8, 12>}, {pipeline_mode = #tpu.pipeline_mode<synchronous>, transform_indices = @transform_1, window_bounds = array<i64: 8, 256>}, {pipeline_mode = #tpu.pipeline_mode<synchronous>, transform_indices = @transform_2, window_bounds = array<i64: 256, 768>}, {pipeline_mode = #tpu.pipeline_mode<synchronous>, transform_indices = @transform_3, window_bounds = array<i64: 12, 768>}, {pipeline_mode = #tpu.pipeline_mode<synchronous>, transform_indices = @transform_4, window_bounds = array<i64: 1, 768>}, {pipeline_mode = #tpu.pipeline_mode<synchronous>, transform_indices = @transform_5, window_bounds = array<i64: 128, 128>}, {pipeline_mode = #tpu.pipeline_mode<synchronous>, transform_indices = @transform_6, window_bounds = array<i64: 1, 128>}, {pipeline_mode = #tpu.pipeline_mode<synchronous>, transform_indices = @transform_7, window_bounds = array<i64: 128, 128>}, {pipeline_mode = #tpu.pipeline_mode<synchronous>, transform_indices = @transform_8, window_bounds = array<i64: 1, 128>}, {pipeline_mode = #tpu.pipeline_mode<synchronous>, transform_indices = @transform_9, window_bounds = array<i64: 128, 512>}, {pipeline_mode = #tpu.pipeline_mode<synchronous>, transform_indices = @transform_10, window_bounds = array<i64: 1, 512>}, {pipeline_mode = #tpu.pipeline_mode<synchronous>, transform_indices = @transform_11, window_bounds = array<i64: 128, 512>}, {pipeline_mode = #tpu.pipeline_mode<synchronous>, transform_indices = @transform_12, window_bounds = array<i64: 1, 512>}, {transform_indices = @transform_13, window_bounds = array<i64: 1, 32, 128>}, {transform_indices = @transform_14, window_bounds = array<i64: 1, 32, 128>}, {pipeline_mode = #tpu.pipeline_mode<synchronous>, transform_indices = @transform_15, window_bounds = array<i64: 8, 256>}]} {
    %c0_i32 = arith.constant 0 : i32
    %0 = arith.cmpi eq, %arg0, %c0_i32 : i32
    %1 = arith.extui %0 : i1 to i32
    %c0_i32_0 = arith.constant 0 : i32
    %2 = arith.cmpi ne, %1, %c0_i32_0 : i32
    scf.if %2 {
      %c0_62 = arith.constant 0 : index
      %c0_63 = arith.constant 0 : index
      %104 = vector.load %arg2[%c0_62, %c0_63] : memref<8x256xf32, #tpu.memory_space<vmem>>, vector<8x256xf32>
      %c0_64 = arith.constant 0 : index
      %c0_65 = arith.constant 0 : index
      %105 = vector.load %arg17[%c0_64, %c0_65] : memref<8x256xf32, #tpu.memory_space<vmem>>, vector<8x256xf32>
      tpu.vector_store %arg17[%c0_64, %c0_65], %104 {strides = array<i32>} : memref<8x256xf32, #tpu.memory_space<vmem>>, vector<8x256xf32>,
    } else {
    }
    %c0 = arith.constant 0 : index
    %c0_1 = arith.constant 0 : index
    %3 = vector.load %arg17[%c0, %c0_1] : memref<8x256xf32, #tpu.memory_space<vmem>>, vector<8x256xf32>
    %c0_2 = arith.constant 0 : index
    %c0_3 = arith.constant 0 : index
    %c0_4 = arith.constant 0 : index
    %4 = vector.load %arg1[%c0_2, %c0_3, %c0_4] : memref<1x8x12xf32, #tpu.memory_space<vmem>>, vector<1x8x12xf32>
    %5 = vector.shape_cast %4 : vector<1x8x12xf32> to vector<8x12xf32>
    %6 = arith.truncf %3 : vector<8x256xf32> to vector<8x256xbf16>
    %c0_5 = arith.constant 0 : index
    %c0_6 = arith.constant 0 : index
    %7 = vector.load %arg3[%c0_5, %c0_6] : memref<256x768xbf16, #tpu.memory_space<vmem>>, vector<256x768xbf16>
    %cst = arith.constant dense<0.000000e+00> : vector<8x768xf32>
    %8 = tpu.matmul %6, %7, %cst {dimension_numbers = #tpu.dot_dimension_numbers<[1], [0], [0], [1], [0, 0, 1, 1], [], []>} : vector<8x256xbf16>, vector<256x768xbf16>, vector<8x768xf32> -> vector<8x768xf32>
    %9 = arith.truncf %5 : vector<8x12xf32> to vector<8x12xbf16>
    %c0_7 = arith.constant 0 : index
    %c0_8 = arith.constant 0 : index
    %10 = vector.load %arg4[%c0_7, %c0_8] : memref<12x768xbf16, #tpu.memory_space<vmem>>, vector<12x768xbf16>
    %cst_9 = arith.constant dense<0.000000e+00> : vector<8x768xf32>
    %11 = tpu.matmul %9, %10, %cst_9 {dimension_numbers = #tpu.dot_dimension_numbers<[1], [0], [0], [1], [0, 0, 1, 1], [], []>} : vector<8x12xbf16>, vector<12x768xbf16>, vector<8x768xf32> -> vector<8x768xf32>
    %c0_10 = arith.constant 0 : index
    %c0_11 = arith.constant 0 : index
    %12 = vector.load %arg5[%c0_10, %c0_11] : memref<1x768xf32, #tpu.memory_space<vmem>>, vector<1x768xf32>
    %13 = vector.broadcast %12 : vector<1x768xf32> to vector<8x768xf32>
    %14 = arith.addf %11, %13 : vector<8x768xf32>
    %15 = vector.extract_strided_slice %8 {offsets = [0, 0], sizes = [8, 256], strides = [1, 1]} : vector<8x768xf32> to vector<8x256xf32>
    %16 = vector.extract_strided_slice %14 {offsets = [0, 0], sizes = [8, 256], strides = [1, 1]} : vector<8x768xf32> to vector<8x256xf32>
    %17 = arith.addf %15, %16 : vector<8x256xf32>
    %18 = arith.negf %17 : vector<8x256xf32>
    %19 = math.exp %18 : vector<8x256xf32>
    %cst_12 = arith.constant 1.000000e+00 : f32
    %20 = vector.broadcast %cst_12 : f32 to vector<8x256xf32>
    %21 = arith.addf %20, %19 : vector<8x256xf32>
    %22 = arith.divf %20, %21 : vector<8x256xf32>
    %23 = vector.extract_strided_slice %8 {offsets = [0, 256], sizes = [8, 256], strides = [1, 1]} : vector<8x768xf32> to vector<8x256xf32>
    %24 = vector.extract_strided_slice %14 {offsets = [0, 256], sizes = [8, 256], strides = [1, 1]} : vector<8x768xf32> to vector<8x256xf32>
    %25 = arith.addf %23, %24 : vector<8x256xf32>
    %26 = arith.negf %25 : vector<8x256xf32>
    %27 = math.exp %26 : vector<8x256xf32>
    %cst_13 = arith.constant 1.000000e+00 : f32
    %28 = vector.broadcast %cst_13 : f32 to vector<8x256xf32>
    %29 = arith.addf %28, %27 : vector<8x256xf32>
    %30 = arith.divf %28, %29 : vector<8x256xf32>
    %31 = vector.extract_strided_slice %8 {offsets = [0, 512], sizes = [8, 256], strides = [1, 1]} : vector<8x768xf32> to vector<8x256xf32>
    %32 = arith.mulf %30, %31 : vector<8x256xf32>
    %33 = vector.extract_strided_slice %14 {offsets = [0, 512], sizes = [8, 256], strides = [1, 1]} : vector<8x768xf32> to vector<8x256xf32>
    %34 = arith.addf %32, %33 : vector<8x256xf32>
    %35 = math.tanh %34 : vector<8x256xf32>
    %36 = arith.mulf %22, %3 : vector<8x256xf32>
    %cst_14 = arith.constant 1.000000e+00 : f32
    %37 = vector.broadcast %cst_14 : f32 to vector<8x256xf32>
    %38 = arith.subf %37, %22 : vector<8x256xf32>
    %39 = arith.mulf %38, %35 : vector<8x256xf32>
    %40 = arith.addf %36, %39 : vector<8x256xf32>
    %c0_15 = arith.constant 0 : index
    %c0_16 = arith.constant 0 : index
    %41 = vector.load %arg17[%c0_15, %c0_16] : memref<8x256xf32, #tpu.memory_space<vmem>>, vector<8x256xf32>
    tpu.vector_store %arg17[%c0_15, %c0_16], %40 {strides = array<i32>} : memref<8x256xf32, #tpu.memory_space<vmem>>, vector<8x256xf32>,
    %c0_17 = arith.constant 0 : index
    %c0_18 = arith.constant 0 : index
    %42 = vector.load %arg16[%c0_17, %c0_18] : memref<8x256xf32, #tpu.memory_space<vmem>>, vector<8x256xf32>
    tpu.vector_store %arg16[%c0_17, %c0_18], %40 {strides = array<i32>} : memref<8x256xf32, #tpu.memory_space<vmem>>, vector<8x256xf32>,
    %43 = arith.truncf %40 : vector<8x256xf32> to vector<8x256xbf16>
    %44 = vector.extract_strided_slice %43 {offsets = [0, 0], sizes = [8, 128], strides = [1, 1]} : vector<8x256xbf16> to vector<8x128xbf16>
    %c0_19 = arith.constant 0 : index
    %c0_20 = arith.constant 0 : index
    %45 = vector.load %arg6[%c0_19, %c0_20] : memref<128x128xbf16, #tpu.memory_space<vmem>>, vector<128x128xbf16>
    %cst_21 = arith.constant dense<0.000000e+00> : vector<8x128xf32>
    %46 = tpu.matmul %44, %45, %cst_21 {dimension_numbers = #tpu.dot_dimension_numbers<[1], [0], [0], [1], [0, 0, 1, 1], [], []>} : vector<8x128xbf16>, vector<128x128xbf16>, vector<8x128xf32> -> vector<8x128xf32>
    %c0_22 = arith.constant 0 : index
    %c0_23 = arith.constant 0 : index
    %47 = vector.load %arg7[%c0_22, %c0_23] : memref<1x128xf32, #tpu.memory_space<vmem>>, vector<1x128xf32>
    %48 = vector.broadcast %47 : vector<1x128xf32> to vector<8x128xf32>
    %49 = arith.addf %46, %48 : vector<8x128xf32>
    %cst_24 = arith.constant 0.000000e+00 : f32
    %50 = vector.broadcast %cst_24 : f32 to vector<8x128xf32>
    %51 = arith.maximumf %49, %50 : vector<8x128xf32>
    %52 = vector.extract_strided_slice %43 {offsets = [0, 128], sizes = [8, 128], strides = [1, 1]} : vector<8x256xbf16> to vector<8x128xbf16>
    %c0_25 = arith.constant 0 : index
    %c0_26 = arith.constant 0 : index
    %53 = vector.load %arg8[%c0_25, %c0_26] : memref<128x128xbf16, #tpu.memory_space<vmem>>, vector<128x128xbf16>
    %cst_27 = arith.constant dense<0.000000e+00> : vector<8x128xf32>
    %54 = tpu.matmul %52, %53, %cst_27 {dimension_numbers = #tpu.dot_dimension_numbers<[1], [0], [0], [1], [0, 0, 1, 1], [], []>} : vector<8x128xbf16>, vector<128x128xbf16>, vector<8x128xf32> -> vector<8x128xf32>
    %c0_28 = arith.constant 0 : index
    %c0_29 = arith.constant 0 : index
    %55 = vector.load %arg9[%c0_28, %c0_29] : memref<1x128xf32, #tpu.memory_space<vmem>>, vector<1x128xf32>
    %56 = vector.broadcast %55 : vector<1x128xf32> to vector<8x128xf32>
    %57 = arith.addf %54, %56 : vector<8x128xf32>
    %cst_30 = arith.constant 0.000000e+00 : f32
    %58 = vector.broadcast %cst_30 : f32 to vector<8x128xf32>
    %59 = arith.maximumf %57, %58 : vector<8x128xf32>
    %60 = arith.truncf %51 : vector<8x128xf32> to vector<8x128xbf16>
    %c0_31 = arith.constant 0 : index
    %c0_32 = arith.constant 0 : index
    %61 = vector.load %arg10[%c0_31, %c0_32] : memref<128x512xbf16, #tpu.memory_space<vmem>>, vector<128x512xbf16>
    %cst_33 = arith.constant dense<0.000000e+00> : vector<8x512xf32>
    %62 = tpu.matmul %60, %61, %cst_33 {dimension_numbers = #tpu.dot_dimension_numbers<[1], [0], [0], [1], [0, 0, 1, 1], [], []>} : vector<8x128xbf16>, vector<128x512xbf16>, vector<8x512xf32> -> vector<8x512xf32>
    %c0_34 = arith.constant 0 : index
    %c0_35 = arith.constant 0 : index
    %63 = vector.load %arg11[%c0_34, %c0_35] : memref<1x512xf32, #tpu.memory_space<vmem>>, vector<1x512xf32>
    %64 = vector.broadcast %63 : vector<1x512xf32> to vector<8x512xf32>
    %65 = arith.addf %62, %64 : vector<8x512xf32>
    %66 = arith.truncf %59 : vector<8x128xf32> to vector<8x128xbf16>
    %c0_36 = arith.constant 0 : index
    %c0_37 = arith.constant 0 : index
    %67 = vector.load %arg12[%c0_36, %c0_37] : memref<128x512xbf16, #tpu.memory_space<vmem>>, vector<128x512xbf16>
    %cst_38 = arith.constant dense<0.000000e+00> : vector<8x512xf32>
    %68 = tpu.matmul %66, %67, %cst_38 {dimension_numbers = #tpu.dot_dimension_numbers<[1], [0], [0], [1], [0, 0, 1, 1], [], []>} : vector<8x128xbf16>, vector<128x512xbf16>, vector<8x512xf32> -> vector<8x512xf32>
    %c0_39 = arith.constant 0 : index
    %c0_40 = arith.constant 0 : index
    %69 = vector.load %arg13[%c0_39, %c0_40] : memref<1x512xf32, #tpu.memory_space<vmem>>, vector<1x512xf32>
    %70 = vector.broadcast %69 : vector<1x512xf32> to vector<8x512xf32>
    %71 = arith.addf %68, %70 : vector<8x512xf32>
    %72 = vector.extract_strided_slice %65 {offsets = [0, 0], sizes = [8, 128], strides = [1, 1]} : vector<8x512xf32> to vector<8x128xf32>
    %c0_41 = arith.constant 0 : index
    %c0_42 = arith.constant 0 : index
    %c0_43 = arith.constant 0 : index
    %73 = vector.load %arg14[%c0_41, %c0_42, %c0_43] : memref<1x32x128xf32, #tpu.memory_space<vmem>>, vector<1x8x128xf32>
    %74 = vector.shape_cast %73 : vector<1x8x128xf32> to vector<8x128xf32>
    %75 = vector.shape_cast %72 : vector<8x128xf32> to vector<1x8x128xf32>
    tpu.vector_store %arg14[%c0_41, %c0_42, %c0_43], %75 {strides = array<i32>} : memref<1x32x128xf32, #tpu.memory_space<vmem>>, vector<1x8x128xf32>,
    %76 = vector.extract_strided_slice %71 {offsets = [0, 0], sizes = [8, 128], strides = [1, 1]} : vector<8x512xf32> to vector<8x128xf32>
    %c0_44 = arith.constant 0 : index
    %c0_45 = arith.constant 0 : index
    %c0_46 = arith.constant 0 : index
    %77 = vector.load %arg15[%c0_44, %c0_45, %c0_46] : memref<1x32x128xf32, #tpu.memory_space<vmem>>, vector<1x8x128xf32>
    %78 = vector.shape_cast %77 : vector<1x8x128xf32> to vector<8x128xf32>
    %79 = vector.shape_cast %76 : vector<8x128xf32> to vector<1x8x128xf32>
    tpu.vector_store %arg15[%c0_44, %c0_45, %c0_46], %79 {strides = array<i32>} : memref<1x32x128xf32, #tpu.memory_space<vmem>>, vector<1x8x128xf32>,
    %80 = vector.extract_strided_slice %65 {offsets = [0, 128], sizes = [8, 128], strides = [1, 1]} : vector<8x512xf32> to vector<8x128xf32>
    %c0_47 = arith.constant 0 : index
    %c8 = arith.constant 8 : index
    %c0_48 = arith.constant 0 : index
    %81 = vector.load %arg14[%c0_47, %c8, %c0_48] : memref<1x32x128xf32, #tpu.memory_space<vmem>>, vector<1x8x128xf32>
    %82 = vector.shape_cast %81 : vector<1x8x128xf32> to vector<8x128xf32>
    %83 = vector.shape_cast %80 : vector<8x128xf32> to vector<1x8x128xf32>
    tpu.vector_store %arg14[%c0_47, %c8, %c0_48], %83 {strides = array<i32>} : memref<1x32x128xf32, #tpu.memory_space<vmem>>, vector<1x8x128xf32>,
    %84 = vector.extract_strided_slice %71 {offsets = [0, 128], sizes = [8, 128], strides = [1, 1]} : vector<8x512xf32> to vector<8x128xf32>
    %c0_49 = arith.constant 0 : index
    %c8_50 = arith.constant 8 : index
    %c0_51 = arith.constant 0 : index
    %85 = vector.load %arg15[%c0_49, %c8_50, %c0_51] : memref<1x32x128xf32, #tpu.memory_space<vmem>>, vector<1x8x128xf32>
    %86 = vector.shape_cast %85 : vector<1x8x128xf32> to vector<8x128xf32>
    %87 = vector.shape_cast %84 : vector<8x128xf32> to vector<1x8x128xf32>
    tpu.vector_store %arg15[%c0_49, %c8_50, %c0_51], %87 {strides = array<i32>} : memref<1x32x128xf32, #tpu.memory_space<vmem>>, vector<1x8x128xf32>,
    %88 = vector.extract_strided_slice %65 {offsets = [0, 256], sizes = [8, 128], strides = [1, 1]} : vector<8x512xf32> to vector<8x128xf32>
    %c0_52 = arith.constant 0 : index
    %c16 = arith.constant 16 : index
    %c0_53 = arith.constant 0 : index
    %89 = vector.load %arg14[%c0_52, %c16, %c0_53] : memref<1x32x128xf32, #tpu.memory_space<vmem>>, vector<1x8x128xf32>
    %90 = vector.shape_cast %89 : vector<1x8x128xf32> to vector<8x128xf32>
    %91 = vector.shape_cast %88 : vector<8x128xf32> to vector<1x8x128xf32>
    tpu.vector_store %arg14[%c0_52, %c16, %c0_53], %91 {strides = array<i32>} : memref<1x32x128xf32, #tpu.memory_space<vmem>>, vector<1x8x128xf32>,
    %92 = vector.extract_strided_slice %71 {offsets = [0, 256], sizes = [8, 128], strides = [1, 1]} : vector<8x512xf32> to vector<8x128xf32>
    %c0_54 = arith.constant 0 : index
    %c16_55 = arith.constant 16 : index
    %c0_56 = arith.constant 0 : index
    %93 = vector.load %arg15[%c0_54, %c16_55, %c0_56] : memref<1x32x128xf32, #tpu.memory_space<vmem>>, vector<1x8x128xf32>
    %94 = vector.shape_cast %93 : vector<1x8x128xf32> to vector<8x128xf32>
    %95 = vector.shape_cast %92 : vector<8x128xf32> to vector<1x8x128xf32>
    tpu.vector_store %arg15[%c0_54, %c16_55, %c0_56], %95 {strides = array<i32>} : memref<1x32x128xf32, #tpu.memory_space<vmem>>, vector<1x8x128xf32>,
    %96 = vector.extract_strided_slice %65 {offsets = [0, 384], sizes = [8, 128], strides = [1, 1]} : vector<8x512xf32> to vector<8x128xf32>
    %c0_57 = arith.constant 0 : index
    %c24 = arith.constant 24 : index
    %c0_58 = arith.constant 0 : index
    %97 = vector.load %arg14[%c0_57, %c24, %c0_58] : memref<1x32x128xf32, #tpu.memory_space<vmem>>, vector<1x8x128xf32>
    %98 = vector.shape_cast %97 : vector<1x8x128xf32> to vector<8x128xf32>
    %99 = vector.shape_cast %96 : vector<8x128xf32> to vector<1x8x128xf32>
    tpu.vector_store %arg14[%c0_57, %c24, %c0_58], %99 {strides = array<i32>} : memref<1x32x128xf32, #tpu.memory_space<vmem>>, vector<1x8x128xf32>,
    %100 = vector.extract_strided_slice %71 {offsets = [0, 384], sizes = [8, 128], strides = [1, 1]} : vector<8x512xf32> to vector<8x128xf32>
    %c0_59 = arith.constant 0 : index
    %c24_60 = arith.constant 24 : index
    %c0_61 = arith.constant 0 : index
    %101 = vector.load %arg15[%c0_59, %c24_60, %c0_61] : memref<1x32x128xf32, #tpu.memory_space<vmem>>, vector<1x8x128xf32>
    %102 = vector.shape_cast %101 : vector<1x8x128xf32> to vector<8x128xf32>
    %103 = vector.shape_cast %100 : vector<8x128xf32> to vector<1x8x128xf32>
    tpu.vector_store %arg15[%c0_59, %c24_60, %c0_61], %103 {strides = array<i32>} : memref<1x32x128xf32, #tpu.memory_space<vmem>>, vector<1x8x128xf32>,
    return
  }
  func.func @transform_0(%arg0: i32) -> (i32, i32, i32) {
    %c0_i32 = arith.constant 0 : i32
    %c0_i32_0 = arith.constant 0 : i32
    %c0_i32_1 = arith.constant 0 : i32
    return %arg0, %c0_i32, %c0_i32_0 : i32, i32, i32
  }
  func.func @transform_1(%arg0: i32) -> (i32, i32) {
    %c0_i32 = arith.constant 0 : i32
    %c0_i32_0 = arith.constant 0 : i32
    %c0_i32_1 = arith.constant 0 : i32
    return %c0_i32, %c0_i32_0 : i32, i32
  }
  func.func @transform_2(%arg0: i32) -> (i32, i32) {
    %c0_i32 = arith.constant 0 : i32
    %c0_i32_0 = arith.constant 0 : i32
    %c0_i32_1 = arith.constant 0 : i32
    return %c0_i32, %c0_i32_0 : i32, i32
  }
  func.func @transform_3(%arg0: i32) -> (i32, i32) {
    %c0_i32 = arith.constant 0 : i32
    %c0_i32_0 = arith.constant 0 : i32
    %c0_i32_1 = arith.constant 0 : i32
    return %c0_i32, %c0_i32_0 : i32, i32
  }
  func.func @transform_4(%arg0: i32) -> (i32, i32) {
    %c0_i32 = arith.constant 0 : i32
    %c0_i32_0 = arith.constant 0 : i32
    %c0_i32_1 = arith.constant 0 : i32
    return %c0_i32, %c0_i32_0 : i32, i32
  }
  func.func @transform_5(%arg0: i32) -> (i32, i32) {
    %c0_i32 = arith.constant 0 : i32
    %c0_i32_0 = arith.constant 0 : i32
    %c0_i32_1 = arith.constant 0 : i32
    return %c0_i32, %c0_i32_0 : i32, i32
  }
  func.func @transform_6(%arg0: i32) -> (i32, i32) {
    %c0_i32 = arith.constant 0 : i32
    %c0_i32_0 = arith.constant 0 : i32
    %c0_i32_1 = arith.constant 0 : i32
    return %c0_i32, %c0_i32_0 : i32, i32
  }
  func.func @transform_7(%arg0: i32) -> (i32, i32) {
    %c0_i32 = arith.constant 0 : i32
    %c0_i32_0 = arith.constant 0 : i32
    %c0_i32_1 = arith.constant 0 : i32
    return %c0_i32, %c0_i32_0 : i32, i32
  }
  func.func @transform_8(%arg0: i32) -> (i32, i32) {
    %c0_i32 = arith.constant 0 : i32
    %c0_i32_0 = arith.constant 0 : i32
    %c0_i32_1 = arith.constant 0 : i32
    return %c0_i32, %c0_i32_0 : i32, i32
  }
  func.func @transform_9(%arg0: i32) -> (i32, i32) {
    %c0_i32 = arith.constant 0 : i32
    %c0_i32_0 = arith.constant 0 : i32
    %c0_i32_1 = arith.constant 0 : i32
    return %c0_i32, %c0_i32_0 : i32, i32
  }
  func.func @transform_10(%arg0: i32) -> (i32, i32) {
    %c0_i32 = arith.constant 0 : i32
    %c0_i32_0 = arith.constant 0 : i32
    %c0_i32_1 = arith.constant 0 : i32
    return %c0_i32, %c0_i32_0 : i32, i32
  }
  func.func @transform_11(%arg0: i32) -> (i32, i32) {
    %c0_i32 = arith.constant 0 : i32
    %c0_i32_0 = arith.constant 0 : i32
    %c0_i32_1 = arith.constant 0 : i32
    return %c0_i32, %c0_i32_0 : i32, i32
  }
  func.func @transform_12(%arg0: i32) -> (i32, i32) {
    %c0_i32 = arith.constant 0 : i32
    %c0_i32_0 = arith.constant 0 : i32
    %c0_i32_1 = arith.constant 0 : i32
    return %c0_i32, %c0_i32_0 : i32, i32
  }
  func.func @transform_13(%arg0: i32) -> (i32, i32, i32) {
    %c0_i32 = arith.constant 0 : i32
    %c0_i32_0 = arith.constant 0 : i32
    %c0_i32_1 = arith.constant 0 : i32
    return %arg0, %c0_i32, %c0_i32_0 : i32, i32, i32
  }
  func.func @transform_14(%arg0: i32) -> (i32, i32, i32) {
    %c0_i32 = arith.constant 0 : i32
    %c0_i32_0 = arith.constant 0 : i32
    %c0_i32_1 = arith.constant 0 : i32
    return %arg0, %c0_i32, %c0_i32_0 : i32, i32, i32
  }
  func.func @transform_15(%arg0: i32) -> (i32, i32) {
    %c0_i32 = arith.constant 0 : i32
    %c0_i32_0 = arith.constant 0 : i32
    %c0_i32_1 = arith.constant 0 : i32
    return %c0_i32, %c0_i32_0 : i32, i32
  }
}

</mosaic_0001>

<bundles_post_ra>
// kernel: tpu_custom_call.1
= control target key start
LH: loop header
LB: loop body
LE: loop exit
PB: predicated region body
PF: predicated region fallthrough
CT: control target
= control target key end

     0   :  { %21 = vsyncpa [#allocation4], 0  ;;  %s3193_s0 = inlined_call_operand.hbm [shape: f32[1,8,12], index: 0, kind: input, shape index: {}]   ;;  %s3194_s1 = inlined_call_operand.hbm [shape: f32[8,256], index: 1, kind: input, shape index: {}]   ;;  %s3195_s2 = inlined_call_operand.hbm [shape: bf16[256,768], index: 2, kind: input, shape index: {}]   ;;  %s3196_s3 = inlined_call_operand.hbm [shape: bf16[12,768], index: 3, kind: input, shape index: {}]   ;;  %s3197_s4 = inlined_call_operand.vmem [shape: f32[1,768], index: 4, kind: input, shape index: {}]   ;;  %s3198_s5 = inlined_call_operand.hbm [shape: bf16[128,128], index: 5, kind: input, shape index: {}]   ;;  %s3199_s6 = inlined_call_operand.vmem [shape: f32[1,128], index: 6, kind: input, shape index: {}]   ;;  %s3200_s7 = inlined_call_operand.hbm [shape: bf16[128,128], index: 7, kind: input, shape index: {}]   ;;  %s3201_s8 = inlined_call_operand.vmem [shape: f32[1,128], index: 8, kind: input, shape index: {}]   ;;  %s3202_s9 = inlined_call_operand.hbm [shape: bf16[128,512], index: 9, kind: input, shape index: {}]   ;;  %s3203_s10 = inlined_call_operand.vmem [shape: f32[1,512], index: 10, kind: input, shape index: {}]   ;;  %s3204_s11 = inlined_call_operand.hbm [shape: bf16[128,512], index: 11, kind: input, shape index: {}]   ;;  %s3205_s12 = inlined_call_operand.vmem [shape: f32[1,512], index: 12, kind: input, shape index: {}]   ;;  %s3206_s13 = inlined_call_operand.hbm [shape: f32[1,32,128], index: 13, kind: output, shape index: {0}]   ;;  %s3207_s14 = inlined_call_operand.hbm [shape: f32[1,32,128], index: 14, kind: output, shape index: {1}]   ;;  %s3208_s15 = inlined_call_operand.hbm [shape: f32[8,256], index: 15, kind: output, shape index: {2}]  }
   0x1   :  { %22 = vsyncpa [#allocation7], 0 }
   0x2   :  { %23 = vsyncpa [#allocation10], 0 }
   0x3   :  { %24 = vsyncpa [#allocation13], 0 }
   0x4   :  { %25 = vsyncpa [#allocation16], 0 }
   0x5   :  { %26 = vsyncpa [#allocation5], 0 }
   0x6   :  { %27 = vsyncpa [#allocation19], 0  ;;  %s2827_s18 = smov [#allocation6]   ;;  %s2571_s22 = scalar_lea.hbm %s3194_s1, 256 }
   0x7   :  { %s44_s19 = sshll.u32 %s2827_s18, 4  ;;  %p2572_p0 = scmp.ne.s32.totalorder %s3194_s1, %s2571_s22  ;;  %s45_s19 = int_to_ptr.vmem [resolvable:$true] %s44_s19 }
   0x8   :  { %p2575_p1 = scmp.lt.u32.totalorder %s2571_s22, %s3194_s1 }
   0xa   :  { %p2577_p2 = pnand %p2575_p1, %p2572_p0 }
   0xc   :  { %2580 = shalt.err (!%p2577_p2)
}
   0xd   :  { %s2581_s27 = scalar_lea.vmem %s45_s19, 256  ;;  %p2586_p4 = scmp.lt.s32.totalorder %s45_s19, %s45_s19 }
   0xe   :  { %p2582_p3 = scmp.ne.s32.totalorder %s45_s19, %s2581_s27  ;;  %p2587_p5 = scmp.lt.s32.totalorder %s2581_s27, %s2581_s27 }
  0x10   :  { %p2588_p6 = por %p2587_p5, %p2586_p4 }
  0x12   :  { %p2589_p7 = pnand %p2588_p6, %p2582_p3 }
  0x14   :  { %2592 = shalt.err (!%p2589_p7)
}
  0x15   :  { %47 = dma.hbm_to_vmem [thread:$0]  %s3194_s1, 256, %s45_s19, [#allocation7]  }
  0x16   :  { %s2828_s30 = smov [#allocation9]   ;;  %s2593_s20 = scalar_lea.hbm %s3196_s3, 768 }
  0x17   :  { %s65_s16 = sshll.u32 %s2828_s30, 4  ;;  %p2594_p8 = scmp.ne.s32.totalorder %s3196_s3, %s2593_s20  ;;  %s66_s16 = int_to_ptr.vmem [resolvable:$true] %s65_s16 }
  0x18   :  { %p2597_p9 = scmp.lt.u32.totalorder %s2593_s20, %s3196_s3 }
  0x1a   :  { %p2599_p10 = pnand %p2597_p9, %p2594_p8 }
  0x1c   :  { %2602 = shalt.err (!%p2599_p10)
}
  0x1d   :  { %s2603_s25 = scalar_lea.vmem %s66_s16, 768  ;;  %p2608_p12 = scmp.lt.s32.totalorder %s66_s16, %s66_s16 }
  0x1e   :  { %p2604_p11 = scmp.ne.s32.totalorder %s66_s16, %s2603_s25  ;;  %p2609_p13 = scmp.lt.s32.totalorder %s2603_s25, %s2603_s25 }
  0x20   :  { %p2610_p0 = por %p2609_p13, %p2608_p12 }
  0x22   :  { %p2611_p1 = pnand %p2610_p0, %p2604_p11 }
  0x24   :  { %2614 = shalt.err (!%p2611_p1)
}
  0x25   :  { %s2829_s1 = smov 384   ;;  %s2830_s19 = smov 24  }
  0x26   :  { %71 = dma.hbm_to_vmem [thread:$0]  %s3196_s3, 768, %s66_s16, [#allocation10], %s2829_s1, %s2829_s1, %s2830_s19  }
  0x27   :  { %s2831_s28 = smov [#allocation12]   ;;  %s2832_s30 = smov [#allocation3]  }
  0x28   :  { %s93_s29 = sshll.u32 %s2831_s28, 4  ;;  %s34_s17 = sshll.u32 %s2832_s30, 4  ;;  %s94_s29 = int_to_ptr.vmem [resolvable:$true] %s93_s29  ;;  %s35_s17 = int_to_ptr.vmem [resolvable:$true] %s34_s17 }
  0x29   :  { %s2615_s21 = scalar_lea.hbm %s3200_s7, 1024 }
  0x2a   :  { %p2616_p2 = scmp.ne.s32.totalorder %s3200_s7, %s2615_s21  ;;  %p2619_p3 = scmp.lt.u32.totalorder %s2615_s21, %s3200_s7 }
  0x2c   :  { %p2621_p4 = pnand %p2619_p3, %p2616_p2 }
  0x2e   :  { %2624 = shalt.err (!%p2621_p4)
}
  0x2f   :  { %s2625_s3 = scalar_lea.vmem %s94_s29, 1024  ;;  %p2630_p6 = scmp.lt.s32.totalorder %s94_s29, %s94_s29 }
  0x30   :  { %p2626_p5 = scmp.ne.s32.totalorder %s94_s29, %s2625_s3  ;;  %p2631_p7 = scmp.lt.s32.totalorder %s2625_s3, %s2625_s3 }
  0x32   :  { %p2632_p8 = por %p2631_p7, %p2630_p6 }
  0x34   :  { %p2633_p9 = pnand %p2632_p8, %p2626_p5 }
  0x36   :  { %2636 = shalt.err (!%p2633_p9)
}
  0x37   :  { %s2833_s16 = smov 64   ;;  %s2834_s26 = smov 4  }
  0x38   :  { %99 = dma.hbm_to_vmem [thread:$0]  %s3200_s7, 1024, %s94_s29, [#allocation13], %s2833_s16, %s2833_s16, %s2834_s26  }
  0x39   :  { %s2637_s20 = scalar_lea.hbm %s3193_s0, 128 }
  0x3a   :  { %p2638_p10 = scmp.ne.s32.totalorder %s3193_s0, %s2637_s20  ;;  %p2641_p11 = scmp.lt.u32.totalorder %s2637_s20, %s3193_s0 }
  0x3c   :  { %p2643_p12 = pnand %p2641_p11, %p2638_p10 }
  0x3e   :  { %2646 = shalt.err (!%p2643_p12)
}
  0x3f   :  { %s2647_s25 = scalar_lea.vmem %s35_s17, 128  ;;  %p2652_p0 = scmp.lt.s32.totalorder %s35_s17, %s35_s17 }
  0x40   :  { %p2648_p13 = scmp.ne.s32.totalorder %s35_s17, %s2647_s25  ;;  %p2653_p1 = scmp.lt.s32.totalorder %s2647_s25, %s2647_s25 }
  0x42   :  { %p2654_p2 = por %p2653_p1, %p2652_p0 }
  0x44   :  { %p2655_p3 = pnand %p2654_p2, %p2648_p13 }
  0x46   :  { %2658 = shalt.err (!%p2655_p3)
}
  0x47   :  { %37 = dma.hbm_to_vmem [thread:$0]  %s3193_s0, 128, %s35_s17, [#allocation4]  }
  0x48   :  { %s2835_s3 = smov [#allocation8]   ;;  %s2836_s28 = smov [#allocation11]  }
  0x49   :  { %s53_s27 = sshll.u32 %s2835_s3, 4  ;;  %s79_s30 = sshll.u32 %s2836_s28, 4  ;;  %s54_s27 = int_to_ptr.vmem [resolvable:$true] %s53_s27  ;;  %s2983_s30 = int_to_ptr.vmem [resolvable:$true] %s79_s30 }
  0x4a   :  { %s2659_s21 = scalar_lea.hbm %s3195_s2, 12288 }
  0x4b   :  { %p2660_p4 = scmp.ne.s32.totalorder %s3195_s2, %s2659_s21  ;;  %p2663_p5 = scmp.lt.u32.totalorder %s2659_s21, %s3195_s2 }
  0x4d   :  { %p2665_p6 = pnand %p2663_p5, %p2660_p4 }
  0x4f   :  { %2668 = shalt.err (!%p2665_p6)
}
  0x50   :  { %s2669_s0 = scalar_lea.vmem %s54_s27, 12288  ;;  %p2674_p8 = scmp.lt.s32.totalorder %s54_s27, %s54_s27 }
  0x51   :  { %p2670_p7 = scmp.ne.s32.totalorder %s54_s27, %s2669_s0  ;;  %p2675_p9 = scmp.lt.s32.totalorder %s2669_s0, %s2669_s0 }
  0x53   :  { %p2676_p10 = por %p2675_p9, %p2674_p8 }
  0x55   :  { %p2677_p11 = pnand %p2676_p10, %p2670_p7 }
  0x57   :  { %2680 = shalt.err (!%p2677_p11)
}
  0x58   :  { %59 = dma.hbm_to_vmem [thread:$0]  %s3195_s2, 12288, %s54_s27, [#allocation7], %s2829_s1, %s2829_s1, %s2830_s19  }
  0x59   :  { %s2681_s28 = scalar_lea.hbm %s3198_s5, 1024 }
  0x5a   :  { %p2682_p12 = scmp.ne.s32.totalorder %s3198_s5, %s2681_s28  ;;  %p2685_p13 = scmp.lt.u32.totalorder %s2681_s28, %s3198_s5 }
  0x5c   :  { %p2687_p0 = pnand %p2685_p13, %p2682_p12 }
  0x5e   :  { %2690 = shalt.err (!%p2687_p0)
}
  0x5f   :  { %s2691_s23 = scalar_lea.vmem %s2983_s30, 1024  ;;  %p2696_p2 = scmp.lt.s32.totalorder %s2983_s30, %s2983_s30 }
  0x60   :  { %p2692_p1 = scmp.ne.s32.totalorder %s2983_s30, %s2691_s23  ;;  %p2697_p3 = scmp.lt.s32.totalorder %s2691_s23, %s2691_s23 }
  0x62   :  { %p2698_p4 = por %p2697_p3, %p2696_p2 }
  0x64   :  { %p2699_p5 = pnand %p2698_p4, %p2692_p1 }
  0x66   :  { %2702 = shalt.err (!%p2699_p5)
}
  0x67   :  { %85 = dma.hbm_to_vmem [thread:$0]  %s3198_s5, 1024, %s2983_s30, [#allocation10], %s2833_s16, %s2833_s16, %s2834_s26  }
  0x68   :  { %s2837_s19 = smov [#allocation14]   ;;  %s2703_s0 = scalar_lea.hbm %s3202_s9, 4096 }
  0x69   :  { %s107_s27 = sshll.u32 %s2837_s19, 4  ;;  %p2704_p6 = scmp.ne.s32.totalorder %s3202_s9, %s2703_s0  ;;  %s108_s27 = int_to_ptr.vmem [resolvable:$true] %s107_s27 }
  0x6a   :  { %p2707_p7 = scmp.lt.u32.totalorder %s2703_s0, %s3202_s9 }
  0x6c   :  { %p2709_p8 = pnand %p2707_p7, %p2704_p6 }
  0x6e   :  { %2712 = shalt.err (!%p2709_p8)
}
  0x6f   :  { %s2713_s28 = scalar_lea.vmem %s108_s27, 4096  ;;  %p2718_p10 = scmp.lt.s32.totalorder %s108_s27, %s108_s27 }
  0x70   :  { %p2714_p9 = scmp.ne.s32.totalorder %s108_s27, %s2713_s28  ;;  %p2719_p11 = scmp.lt.s32.totalorder %s2713_s28, %s2713_s28 }
  0x72   :  { %p2720_p12 = por %p2719_p11, %p2718_p10 }
  0x74   :  { %p2721_p13 = pnand %p2720_p12, %p2714_p9 }
  0x76   :  { %2724 = shalt.err (!%p2721_p13)
}
  0x77   :  { %s2838_s5 = smov 256   ;;  %s2839_s16 = smov 16  }
  0x78   :  { %113 = dma.hbm_to_vmem [thread:$0]  %s3202_s9, 4096, %s108_s27, [#allocation13], %s2838_s5, %s2838_s5, %s2839_s16  }
  0x79   :  { %s2840_s18 = smov [#allocation15]   ;;  %s2725_s23 = scalar_lea.hbm %s3204_s11, 4096 }
  0x7a   :  { %s121_s20 = sshll.u32 %s2840_s18, 4  ;;  %p2726_p0 = scmp.ne.s32.totalorder %s3204_s11, %s2725_s23  ;;  %s122_s20 = int_to_ptr.vmem [resolvable:$true] %s121_s20 }
  0x7b   :  { %p2729_p1 = scmp.lt.u32.totalorder %s2725_s23, %s3204_s11 }
  0x7d   :  { %p2731_p2 = pnand %p2729_p1, %p2726_p0 }
  0x7f   :  { %2734 = shalt.err (!%p2731_p2)
}
  0x80   :  { %s2735_s25 = scalar_lea.vmem %s122_s20, 4096  ;;  %p2740_p4 = scmp.lt.s32.totalorder %s122_s20, %s122_s20 }
  0x81   :  { %p2736_p3 = scmp.ne.s32.totalorder %s122_s20, %s2735_s25  ;;  %p2741_p5 = scmp.lt.s32.totalorder %s2735_s25, %s2735_s25 }
  0x83   :  { %p2742_p6 = por %p2741_p5, %p2740_p4 }
  0x85   :  { %p2743_p7 = pnand %p2742_p6, %p2736_p3 }
  0x87   :  { %2746 = shalt.err (!%p2743_p7)
}
  0x88   :  { %127 = dma.hbm_to_vmem [thread:$0]  %s3204_s11, 4096, %s122_s20, [#allocation16], %s2838_s5, %s2838_s5, %s2839_s16  }
  0x89   :  { %2813 = dma.done.wait [#allocation4], 128  }
  0x8a   :  { %2814 = vsyncadd [#allocation4], 4294967168 }
  0x8b   :  { %2815 = dma.done.wait [#allocation7], 12544  }
  0x8c   :  { %2816 = vsyncadd [#allocation7], 4294954752 }
  0x8d   :  { %2817 = dma.done.wait [#allocation10], 1792  }
  0x8e   :  { %2818 = vsyncadd [#allocation10], 4294965504 }
  0x8f   :  { %2819 = dma.done.wait [#allocation13], 5120  }
  0x90   :  { %2820 = vsyncadd [#allocation13], 4294962176 }
  0x91   :  { %2821 = dma.done.wait [#allocation16], 4096  }
  0x92   :  { %2822 = vsyncadd [#allocation16], 4294963200  ;;  %v2286_v0 = vld [vmem:[#allocation8 + $0x4] ss:$24 sps:$4 sm:$0xff]   ;;  %v2288_v1 = vld [vmem:[#allocation8] ss:$24 sps:$4 sm:$0xff]  }
  0x93   :  { %744 = vmatprep.subr.bf16.mxu0 %v2286_v0  ;;  %v2289_v2 = vld [vmem:[#allocation8 + $0x34] ss:$24 sps:$4 sm:$0xff]   ;;  %v2291_v3 = vld [vmem:[#allocation8 + $0x30] ss:$24 sps:$4 sm:$0xff]   ;;  %v2292_v4 = vld [vmem:[#allocation8 + $0x64] ss:$24 sps:$4 sm:$0xff]  }
  0x94   :  { %745 = vmatpush1.bf16.msra.mxu0 %v2288_v1  ;;  %v2294_v5 = vld [vmem:[#allocation8 + $0x60] ss:$24 sps:$4 sm:$0xff]   ;;  %v2295_v6 = vld [vmem:[#allocation8 + $0x94] ss:$24 sps:$4 sm:$0xff]   ;;  %v2297_v9 = vld [vmem:[#allocation8 + $0x90] ss:$24 sps:$4 sm:$0xff]  }
  0x95   :  { %746 = vmatprep.subr.bf16.mxu0 %v2289_v2  ;;  %v2306_v7 = vld [vmem:[#allocation8 + $0xc] ss:$24 sps:$4 sm:$0xff]   ;;  %v2309_v8 = vld [vmem:[#allocation8 + $0x8] ss:$24 sps:$4 sm:$0xff]   ;;  %v2312_v11 = vld [vmem:[#allocation8 + $0x3c] ss:$24 sps:$4 sm:$0xff]  }
  0x96   :  { %785 = vmatprep.subr.bf16.mxu1 %v2306_v7  ;;  %v2298_v10 = vld [vmem:[#allocation8 + $0xc4] ss:$24 sps:$4 sm:$0xff]   ;;  %v2315_v12 = vld [vmem:[#allocation8 + $0x38] ss:$24 sps:$4 sm:$0xff]   ;;  %v2301_v14 = vld [vmem:[#allocation8 + $0xf4] ss:$24 sps:$4 sm:$0xff]  }
  0x97   :  { %786 = vmatpush1.bf16.msra.mxu1 %v2309_v8  ;;  %v2300_v13 = vld [vmem:[#allocation8 + $0xc0] ss:$24 sps:$4 sm:$0xff]   ;;  %v2318_v15 = vld [vmem:[#allocation8 + $0x6c] ss:$24 sps:$4 sm:$0xff]   ;;  %v2324_v17 = vld [vmem:[#allocation8 + $0x9c] ss:$24 sps:$4 sm:$0xff]  }
  0x98   :  { %747 = vmatpush1.bf16.msra.mxu0 %v2291_v3  ;;  %787 = vmatprep.subr.bf16.mxu1 %v2312_v11  ;;  %v2321_v16 = vld [vmem:[#allocation8 + $0x68] ss:$24 sps:$4 sm:$0xff]   ;;  %v2304_v19 = vld [vmem:[#allocation8 + $0x124] ss:$24 sps:$4 sm:$0xff]   ;;  %v2327_v20 = vld [vmem:[#allocation8 + $0x98] ss:$24 sps:$4 sm:$0xff]  }
  0x99   :  { %748 = vmatprep.subr.bf16.mxu0 %v2292_v4  ;;  %v2303_v18 = vld [vmem:[#allocation8 + $0xf0] ss:$24 sps:$4 sm:$0xff]   ;;  %v2330_v21 = vld [vmem:[#allocation8 + $0xcc] ss:$24 sps:$4 sm:$0xff]   ;;  %v2308_v22 = vld [vmem:[#allocation8 + $0x120] ss:$24 sps:$4 sm:$0xff]  }
  0x9a   :  { %v2310_v23 = vld [vmem:[#allocation8 + $0x154] ss:$24 sps:$4 sm:$0xff]   ;;  %v2333_v24 = vld [vmem:[#allocation8 + $0xc8] ss:$24 sps:$4 sm:$0xff]   ;;  %v2316_v27 = vld [vmem:[#allocation8 + $0x184] ss:$24 sps:$4 sm:$0xff]  }
  0x9b   :  { %788 = vmatpush1.bf16.msra.mxu1 %v2315_v12  ;;  %v2336_v25 = vld [vmem:[#allocation8 + $0xfc] ss:$24 sps:$4 sm:$0xff]   ;;  %v2314_v26 = vld [vmem:[#allocation8 + $0x150] ss:$24 sps:$4 sm:$0xff]   ;;  %v2342_v29 = vld [vmem:[#allocation8 + $0x12c] ss:$24 sps:$4 sm:$0xff]  }
  0x9c   :  { %749 = vmatpush1.bf16.msra.mxu0 %v2294_v5  ;;  %789 = vmatprep.subr.bf16.mxu1 %v2318_v15  ;;  %v2339_v28 = vld [vmem:[#allocation8 + $0xf8] ss:$24 sps:$4 sm:$0xff]   ;;  %v2322_v31 = vld [vmem:[#allocation8 + $0x1b4] ss:$24 sps:$4 sm:$0xff]   ;;  %v2345_v32 = vld [vmem:[#allocation8 + $0x128] ss:$24 sps:$4 sm:$0xff]  }
  0x9d   :  { %750 = vmatprep.subr.bf16.mxu0 %v2295_v6  ;;  %v2320_v30 = vld [vmem:[#allocation8 + $0x180] ss:$24 sps:$4 sm:$0xff]   ;;  %v2348_v33 = vld [vmem:[#allocation8 + $0x15c] ss:$24 sps:$4 sm:$0xff]   ;;  %v2326_v34 = vld [vmem:[#allocation8 + $0x1b0] ss:$24 sps:$4 sm:$0xff]  }
  0x9e   :  { %v3044_v35 = vld [vmem:[#allocation6 + $0x8] sm:$0xff]  ;;  %v2354_v39 = vld [vmem:[#allocation8 + $0x18c] ss:$24 sps:$4 sm:$0xff]   ;;  %v2357_v42 = vld [vmem:[#allocation8 + $0x188] ss:$24 sps:$4 sm:$0xff]   ;;  %vm934_vm0 = vcmask 1045504  }
  0x9f   :  { %790 = vmatpush1.bf16.msra.mxu1 %v2321_v16  ;;  %v2328_v36 = vld [vmem:[#allocation8 + $0x1e4] ss:$24 sps:$4 sm:$0xff]   ;;  %v3048_v37 = vpack.c.bf16 %v3044_v35, %v3044_v35  ;;  %v2351_v38 = vld [vmem:[#allocation8 + $0x158] ss:$24 sps:$4 sm:$0xff]   ;;  %v2334_v41 = vld [vmem:[#allocation8 + $0x214] ss:$24 sps:$4 sm:$0xff]  }
  0xa0   :  { %751 = vmatpush1.bf16.msra.mxu0 %v2297_v9  ;;  %791 = vmatprep.subr.bf16.mxu1 %v2324_v17  ;;  %v2332_v40 = vld [vmem:[#allocation8 + $0x1e0] ss:$24 sps:$4 sm:$0xff]   ;;  %v2360_v43 = vld [vmem:[#allocation8 + $0x1bc] ss:$24 sps:$4 sm:$0xff]   ;;  %v2338_v44 = vld [vmem:[#allocation8 + $0x210] ss:$24 sps:$4 sm:$0xff]  }
  0xa1   :  { %752 = vmatprep.subr.bf16.mxu0 %v2298_v10  ;;  %776 = vmatprep.mubr.bf16.mxu0 %v3048_v37  ;;  %v2340_v45 = vld [vmem:[#allocation8 + $0x244] ss:$24 sps:$4 sm:$0xff]   ;;  %v2363_v46 = vld [vmem:[#allocation8 + $0x1b8] ss:$24 sps:$4 sm:$0xff]   ;;  %v2346_v49 = vld [vmem:[#allocation8 + $0x274] ss:$24 sps:$4 sm:$0xff]  }
  0xa2   :  { %817 = vmatprep.mubr.bf16.mxu1 %v3048_v37  ;;  %v2364_v47 = vld [vmem:[#allocation8 + $0x1ec] ss:$24 sps:$4 sm:$0xff]   ;;  %v2344_v48 = vld [vmem:[#allocation8 + $0x240] ss:$24 sps:$4 sm:$0xff]   ;;  %v2370_v51 = vld [vmem:[#allocation8 + $0x21c] ss:$24 sps:$4 sm:$0xff]  }
  0xa3   :  { %792 = vmatpush1.bf16.msra.mxu1 %v2327_v20  ;;  %v2369_v50 = vld [vmem:[#allocation8 + $0x1e8] ss:$24 sps:$4 sm:$0xff]   ;;  %v2352_v53 = vld [vmem:[#allocation8 + $0x2a4] ss:$24 sps:$4 sm:$0xff]   ;;  %v2375_v54 = vld [vmem:[#allocation8 + $0x218] ss:$24 sps:$4 sm:$0xff]  }
  0xa4   :  { %753 = vmatpush1.bf16.msra.mxu0 %v2300_v13  ;;  %793 = vmatprep.subr.bf16.mxu1 %v2330_v21  ;;  %v2350_v52 = vld [vmem:[#allocation8 + $0x270] ss:$24 sps:$4 sm:$0xff]   ;;  %v2376_v55 = vld [vmem:[#allocation8 + $0x24c] ss:$24 sps:$4 sm:$0xff]   ;;  %v2356_v56 = vld [vmem:[#allocation8 + $0x2a0] ss:$24 sps:$4 sm:$0xff]  }
  0xa5   :  { %754 = vmatprep.subr.bf16.mxu0 %v2301_v14  ;;  %v2358_v57 = vld [vmem:[#allocation8 + $0x2d4] ss:$24 sps:$4 sm:$0xff]   ;;  %v2381_v58 = vld [vmem:[#allocation8 + $0x248] ss:$24 sps:$4 sm:$0xff]   ;;  %v2387_v63 = vld [vmem:[#allocation8 + $0x278] ss:$24 sps:$4 sm:$0xff]  }
  0xa6   :  { %v2382_v59 = vld [vmem:[#allocation8 + $0x27c] ss:$24 sps:$4 sm:$0xff]   ;;  %v2362_v60 = vld [vmem:[#allocation8 + $0x2d0] ss:$24 sps:$4 sm:$0xff]   ;;  %v2388_v0 = vld [vmem:[#allocation8 + $0x2ac] ss:$24 sps:$4 sm:$0xff]  }
  0xa7   :  { %794 = vmatpush1.bf16.msra.mxu1 %v2333_v24  ;;  %v2368_v61 = vld [vmem:[#allocation8 + $0x14] ss:$24 sps:$4 sm:$0xff]   ;;  %v2366_v2 = vld [vmem:[#allocation8 + $0x10] ss:$24 sps:$4 sm:$0xff]   ;;  %v2374_v3 = vld [vmem:[#allocation8 + $0x44] ss:$24 sps:$4 sm:$0xff]  }
  0xa8   :  { %755 = vmatpush1.bf16.msra.mxu0 %v2303_v18  ;;  %795 = vmatprep.subr.bf16.mxu1 %v2336_v25  ;;  %v3052_v62 = vld [vmem:[#allocation6] sm:$0xff]  ;;  %v2393_v4 = vld [vmem:[#allocation8 + $0x2a8] ss:$24 sps:$4 sm:$0xff]   ;;  %v2409_v11 = vld [vmem:[#allocation9 + $0xc] ss:$24 sps:$4 sm:$0x3f]  }
  0xa9   :  { %756 = vmatprep.subr.bf16.mxu0 %v2304_v19  ;;  %v3056_v1 = vpack.c.bf16 %v3052_v62, %v3052_v62  ;;  %v2394_v5 = vld [vmem:[#allocation8 + $0x2dc] ss:$24 sps:$4 sm:$0xff]   ;;  %v2372_v6 = vld [vmem:[#allocation8 + $0x40] ss:$24 sps:$4 sm:$0xff]   ;;  %v2378_v10 = vld [vmem:[#allocation8 + $0x70] ss:$24 sps:$4 sm:$0xff]  }
  0xaa   :  { %v2380_v7 = vld [vmem:[#allocation8 + $0x74] ss:$24 sps:$4 sm:$0xff]   ;;  %v2411_v8 = vld [vmem:[#allocation9 + $0x8] ss:$24 sps:$4 sm:$0x3f]   ;;  %v2841_v18 = vmov 0  }
  0xab   :  { %796 = vmatpush1.bf16.msra.mxu1 %v2339_v28  ;;  %v2399_v9 = vld [vmem:[#allocation8 + $0x2d8] ss:$24 sps:$4 sm:$0xff]   ;;  %v2386_v12 = vld [vmem:[#allocation8 + $0xa4] ss:$24 sps:$4 sm:$0xff]   ;;  %v942_v13 = vsel %vm934_vm0, %v2411_v8, 0  ;;  %v165_v20 = vld [vmem:[#allocation3] sm:$0xff] }
  0xac   :  { %757 = vmatpush1.bf16.msra.mxu0 %v2308_v22  ;;  %797 = vmatprep.subr.bf16.mxu1 %v2342_v29  ;;  %v2433_v14 = vld [vmem:[#allocation9 + $0x14] ss:$24 sps:$4 sm:$0x3f]   ;;  %v2384_v15 = vld [vmem:[#allocation8 + $0xa0] ss:$24 sps:$4 sm:$0xff]   ;;  %v867_v24 = vpack.c.bf16 %v165_v20, %v165_v20  ;;  %vm930_vm1 = vcmask 97280  }
  0xad   :  { %758 = vmatprep.subr.bf16.mxu0 %v2310_v23  ;;  %v2392_v16 = vld [vmem:[#allocation8 + $0xd4] ss:$24 sps:$4 sm:$0xff]   ;;  %v2390_v17 = vld [vmem:[#allocation8 + $0xd0] ss:$24 sps:$4 sm:$0xff]   ;;  %v2398_v19 = vld [vmem:[#allocation8 + $0x104] ss:$24 sps:$4 sm:$0xff]  }
  0xae   :  { %v2435_v21 = vld [vmem:[#allocation9 + $0x10] ss:$24 sps:$4 sm:$0x3f]   ;;  %v2396_v22 = vld [vmem:[#allocation8 + $0x100] ss:$24 sps:$4 sm:$0xff]   ;;  %vm2843_vm2 = vmmov 0  }
  0xaf   :  { %798 = vmatpush1.bf16.msra.mxu1 %v2345_v32  ;;  %v2402_v23 = vld [vmem:[#allocation8 + $0x134] ss:$24 sps:$4 sm:$0xff]   ;;  %v2400_v25 = vld [vmem:[#allocation8 + $0x130] ss:$24 sps:$4 sm:$0xff]   ;;  %v2403_v28 = vld [vmem:[#allocation8 + $0x160] ss:$24 sps:$4 sm:$0xff]  }
  0xb0   :  { %759 = vmatpush1.bf16.msra.mxu0 %v2314_v26  ;;  %799 = vmatprep.subr.bf16.mxu1 %v2348_v33  ;;  %v948_v26 = vsel %vm934_vm0, %v2435_v21, 0  ;;  %v2408_v29 = vld [vmem:[#allocation8 + $0x194] ss:$24 sps:$4 sm:$0xff]   ;;  %v2412_v32 = vld [vmem:[#allocation8 + $0x1c0] ss:$24 sps:$4 sm:$0xff]  }
  0xb1   :  { %760 = vmatprep.subr.bf16.mxu0 %v2316_v27  ;;  %v2405_v27 = vld [vmem:[#allocation8 + $0x164] ss:$24 sps:$4 sm:$0xff]   ;;  %v2417_v33 = vld [vmem:[#allocation8 + $0x1f4] ss:$24 sps:$4 sm:$0xff]  }
  0xb2   :  { %v2475_v8 = vld [vmem:[#allocation14 + $0x64] ss:$16 sps:$4 sm:$0xff]  }
  0xb3   :  { %800 = vmatpush1.bf16.msra.mxu1 %v2351_v38  ;;  %v2423_v38 = vld [vmem:[#allocation8 + $0x254] ss:$24 sps:$4 sm:$0xff]  }
  0xb4   :  { %761 = vmatpush1.bf16.msra.mxu0 %v2320_v30  ;;  %801 = vmatprep.subr.bf16.mxu1 %v2354_v39  ;;  %v2406_v30 = vld [vmem:[#allocation8 + $0x190] ss:$24 sps:$4 sm:$0xff]   ;;  %v2487_v21 = vld [vmem:[#allocation14 + $0xa4] ss:$16 sps:$4 sm:$0xff]  }
  0xb5   :  { %762 = vmatprep.subr.bf16.mxu0 %v2322_v31  ;;  %v2414_v31 = vld [vmem:[#allocation8 + $0x1c4] ss:$24 sps:$4 sm:$0xff]   ;;  %v2421_v39 = vld [vmem:[#allocation8 + $0x250] ss:$24 sps:$4 sm:$0xff]  }
  0xb7   :  { %802 = vmatpush1.bf16.msra.mxu1 %v2357_v42  ;;  %v2429_v42 = vld [vmem:[#allocation8 + $0x2b4] ss:$24 sps:$4 sm:$0xff]  }
  0xb8   :  { %763 = vmatpush1.bf16.msra.mxu0 %v2326_v34  ;;  %803 = vmatprep.subr.bf16.mxu1 %v2360_v43  ;;  %v2415_v34 = vld [vmem:[#allocation8 + $0x1f0] ss:$24 sps:$4 sm:$0xff]  }
  0xb9   :  { %764 = vmatprep.subr.bf16.mxu0 %v2328_v36  ;;  %v2420_v36 = vld [vmem:[#allocation8 + $0x224] ss:$24 sps:$4 sm:$0xff]   ;;  %v2427_v43 = vld [vmem:[#allocation8 + $0x2b0] ss:$24 sps:$4 sm:$0xff]  }
  0xbb   :  { %804 = vmatpush1.bf16.msra.mxu1 %v2363_v46  ;;  %v2436_v46 = vld [vmem:[#allocation9 + $0x4] ss:$24 sps:$4 sm:$0x3f]  }
  0xbc   :  { %765 = vmatpush1.bf16.msra.mxu0 %v2332_v40  ;;  %805 = vmatprep.subr.bf16.mxu1 %v2364_v47  ;;  %v2426_v40 = vld [vmem:[#allocation8 + $0x284] ss:$24 sps:$4 sm:$0xff]   ;;  %v2438_v47 = vld [vmem:[#allocation9] ss:$24 sps:$4 sm:$0x3f]  }
  0xbd   :  { %766 = vmatprep.subr.bf16.mxu0 %v2334_v41  ;;  %v2424_v41 = vld [vmem:[#allocation8 + $0x280] ss:$24 sps:$4 sm:$0xff]  }
  0xbf   :  { %806 = vmatpush1.bf16.msra.mxu1 %v2369_v50  ;;  %v2842_v50 = vmov 0.0  }
  0xc0   :  { %767 = vmatpush1.bf16.msra.mxu0 %v2338_v44  ;;  %807 = vmatprep.subr.bf16.mxu1 %v2370_v51  ;;  %v2432_v44 = vld [vmem:[#allocation8 + $0x2e4] ss:$24 sps:$4 sm:$0xff]  }
  0xc1   :  { %768 = vmatprep.subr.bf16.mxu0 %v2340_v45  ;;  %v2430_v45 = vld [vmem:[#allocation8 + $0x2e0] ss:$24 sps:$4 sm:$0xff]  }
  0xc2   :  { %v2440_v51 = vld [vmem:[#allocation11 + $0x8] sm:$0xff]  }
  0xc3   :  { %808 = vmatpush1.bf16.msra.mxu1 %v2375_v54  ;;  %v2443_v54 = vld [vmem:[#allocation11 + $0x20] sm:$0xff]  }
  0xc4   :  { %769 = vmatpush1.bf16.msra.mxu0 %v2344_v48  ;;  %809 = vmatprep.subr.bf16.mxu1 %v2376_v55  ;;  %v936_v48 = vsel %vm934_vm0, %v2438_v47, 0  ;;  %v2444_v55 = vld [vmem:[#allocation11 + $0x28] sm:$0xff]  }
  0xc5   :  { %770 = vmatprep.subr.bf16.mxu0 %v2346_v49  ;;  %v2439_v49 = vld [vmem:[#allocation11] sm:$0xff]  }
  0xc7   :  { %810 = vmatpush1.bf16.msra.mxu1 %v2381_v58  ;;  %v876_v58 = vlaneseq }
  0xc8   :  { %771 = vmatpush1.bf16.msra.mxu0 %v2350_v52  ;;  %811 = vmatprep.subr.bf16.mxu1 %v2382_v59  ;;  %v2441_v52 = vld [vmem:[#allocation11 + $0x10] sm:$0xff]  }
  0xc9   :  { %772 = vmatprep.subr.bf16.mxu0 %v2352_v53  ;;  %v2442_v53 = vld [vmem:[#allocation11 + $0x18] sm:$0xff]   ;;  %v2455_v59 = vld [vmem:[#allocation14] ss:$16 sps:$4 sm:$0xff]  }
  0xcb   :  { %812 = vmatpush1.bf16.msra.mxu1 %v2387_v63  ;;  %v3086_v63 = vshrl.u32 %v876_v58, 7 }
  0xcc   :  { %773 = vmatpush1.bf16.msra.mxu0 %v2356_v56  ;;  %813 = vmatprep.subr.bf16.mxu1 %v2388_v0  ;;  %v2445_v56 = vld [vmem:[#allocation11 + $0x30] sm:$0xff]  }
  0xcd   :  { %774 = vmatprep.subr.bf16.mxu0 %v2358_v57  ;;  %v2446_v57 = vld [vmem:[#allocation11 + $0x38] sm:$0xff]   ;;  %v2461_v0 = vld [vmem:[#allocation14 + $0x20] ss:$16 sps:$4 sm:$0xff]  }
  0xcf   :  { %814 = vmatpush1.bf16.msra.mxu1 %v2393_v4  ;;  %v3097_v4 = vsub.s32 3, %v3086_v63 }
  0xd0   :  { %775 = vmatpush1.bf16.msra.mxu0 %v2362_v60  ;;  %815 = vmatprep.subr.bf16.mxu1 %v2394_v5  ;;  %v2457_v60 = vld [vmem:[#allocation14 + $0x4] ss:$16 sps:$4 sm:$0xff]   ;;  %v2467_v5 = vld [vmem:[#allocation14 + $0x40] ss:$16 sps:$4 sm:$0xff]  }
  0xd1   :  { %826 = vmatprep.subr.bf16.mxu0 %v2368_v61  ;;  %v2463_v61 = vld [vmem:[#allocation14 + $0x24] ss:$16 sps:$4 sm:$0xff]  }
  0xd3   :  { %777 = vmatmul.mubr.bf16.vlgmr.msra.gmra.mrb[0].mxu0 %v3056_v1  ;;  %816 = vmatpush1.bf16.msra.mxu1 %v2399_v9 }
  0xd4   :  { %827 = vmatpush1.bf16.msra.mxu0 %v2366_v2  ;;  %858 = vmatprep.mubr.bf16.mxu0 %v3048_v37  ;;  %v2418_v37 = vld [vmem:[#allocation8 + $0x220] ss:$24 sps:$4 sm:$0xff]   ;;  %v3089_v2 = vsub.s32 2, %v3086_v63 }
  0xd5   :  { %828 = vmatprep.subr.bf16.mxu0 %v2374_v3  ;;  %2104 = vmatprep.subr.msk.bf16.mxu1 %vm934_vm0, %v2409_v11  ;;  %v3094_v3 = vld [vmem:[%s3197_s4] sm:$0x3f] }
  0xd6   :  { %818 = vmatmul.mubr.bf16.vlgmr.msra.gmra.mrb[0].mxu1 %v3056_v1  ;;  %v887_v9 = vrot.slane %v3094_v3, %v3089_v2  ;;  %v891_v11 = vrot.slane %v3094_v3, %v3097_v4 }
  0xd7   :  { %995 = vmatpush1.bf16.msra.mxu1 %v942_v13  ;;  %1026 = vmatprep.mubr.bf16.mxu1 %v2841_v18  ;;  %v2473_v13 = vld [vmem:[#allocation14 + $0x60] ss:$16 sps:$4 sm:$0xff]  }
  0xd8   :  { %829 = vmatpush1.bf16.msra.mxu0 %v2372_v6  ;;  %2106 = vmatprep.subr.msk.bf16.mxu1 %vm934_vm0, %v2433_v14  ;;  %v2481_v14 = vld [vmem:[#allocation14 + $0x84] ss:$16 sps:$4 sm:$0xff]  }
  0xd9   :  { %830 = vmatprep.subr.bf16.mxu0 %v2380_v7 }
  0xdc   :  { %831 = vmatpush1.bf16.msra.mxu0 %v2378_v10 }
  0xdd   :  { %832 = vmatprep.subr.bf16.mxu0 %v2386_v12 }
  0xe0   :  { %833 = vmatpush1.bf16.msra.mxu0 %v2384_v15 }
  0xe1   :  { %834 = vmatprep.subr.bf16.mxu0 %v2392_v16 }
  0xe2   :  { %2105 = vmatmul.mubr.msk.bf16.vlgmr.msra.gmra.mrb[0].mxu1 %vm930_vm1, %v867_v24 }
  0xe3   :  { %1036 = vmatpush1.bf16.msra.mxu1 %v948_v26  ;;  %1067 = vmatprep.mubr.bf16.mxu1 %v2841_v18  ;;  %v2485_v26 = vld [vmem:[#allocation14 + $0xa0] ss:$16 sps:$4 sm:$0xff]  }
  0xe4   :  { %835 = vmatpush1.bf16.msra.mxu0 %v2390_v17  ;;  %2212 = vmatprep.subr.bf16.mxu1 %v2842_v50  ;;  %v2479_v17 = vld [vmem:[#allocation14 + $0x80] ss:$16 sps:$4 sm:$0xff]  }
  0xe5   :  { %836 = vmatprep.subr.bf16.mxu0 %v2398_v19 }
  0xe8   :  { %837 = vmatpush1.bf16.msra.mxu0 %v2396_v22 }
  0xe9   :  { %838 = vmatprep.subr.bf16.mxu0 %v2402_v23 }
  0xea   :  { %2107 = vmatmul.mubr.msk.bf16.vlgmr.msra.gmra.mrb[4].mxu1 %vm930_vm1, %v867_v24 }
  0xeb   :  { %2213 = vmatpush3.bf16.msra.mxu1 %v2439_v49  ;;  %2228 = vmatprep.mubr.msk.bf16.mxu1 %vm2843_vm2, %v2842_v50 }
  0xec   :  { %839 = vmatpush1.bf16.msra.mxu0 %v2400_v25  ;;  %2214 = vmatprep.subr.bf16.mxu1 %v2842_v50 }
  0xed   :  { %840 = vmatprep.subr.bf16.mxu0 %v2405_v27  ;;  %v2493_v27 = vld [vmem:[#allocation14 + $0xc4] ss:$16 sps:$4 sm:$0xff]  }
  0xef   :  { %2215 = vmatpush3.bf16.msra.mxu1 %v2440_v51 }
  0xf0   :  { %841 = vmatpush1.bf16.msra.mxu0 %v2403_v28  ;;  %2216 = vmatprep.subr.bf16.mxu1 %v2842_v50  ;;  %v2491_v28 = vld [vmem:[#allocation14 + $0xc0] ss:$16 sps:$4 sm:$0xff]  }
  0xf1   :  { %842 = vmatprep.subr.bf16.mxu0 %v2408_v29 }
  0xf3   :  { %2217 = vmatpush3.bf16.msra.mxu1 %v2441_v52 }
  0xf4   :  { %843 = vmatpush1.bf16.msra.mxu0 %v2406_v30  ;;  %2218 = vmatprep.subr.bf16.mxu1 %v2842_v50 }
  0xf5   :  { %844 = vmatprep.subr.bf16.mxu0 %v2414_v31 }
  0xf7   :  { %2219 = vmatpush3.bf16.msra.mxu1 %v2442_v53 }
  0xf8   :  { %845 = vmatpush1.bf16.msra.mxu0 %v2412_v32  ;;  %2220 = vmatprep.subr.bf16.mxu1 %v2842_v50 }
  0xf9   :  { %846 = vmatprep.subr.bf16.mxu0 %v2417_v33  ;;  %v894_v33 = vsub.s32 4, %v3086_v63 }
  0xfb   :  { %2221 = vmatpush3.bf16.msra.mxu1 %v2443_v54 }
  0xfc   :  { %847 = vmatpush1.bf16.msra.mxu0 %v2415_v34  ;;  %2222 = vmatprep.subr.bf16.mxu1 %v2842_v50  ;;  %v898_v34 = vsub.s32 5, %v3086_v63 }
  0xfd   :  { %848 = vmatprep.subr.bf16.mxu0 %v2420_v36  ;;  %v895_v36 = vrot.slane %v3094_v3, %v894_v33  ;;  %v2478_v33 = vld [vmem:[#allocation14 + $0x6c] ss:$16 sps:$4 sm:$0xff]  }
  0xff   :  { %2223 = vmatpush3.bf16.msra.mxu1 %v2444_v55 }
 0x100   :  { %849 = vmatpush1.bf16.msra.mxu0 %v2418_v37  ;;  %2224 = vmatprep.subr.bf16.mxu1 %v2842_v50  ;;  %v899_v37 = vrot.slane %v3094_v3, %v898_v34  ;;  %v2476_v34 = vld [vmem:[#allocation14 + $0x68] ss:$16 sps:$4 sm:$0xff]  }
 0x101   :  { %850 = vmatprep.subr.bf16.mxu0 %v2423_v38 }
 0x103   :  { %2225 = vmatpush3.bf16.msra.mxu1 %v2445_v56 }
 0x104   :  { %851 = vmatpush1.bf16.msra.mxu0 %v2421_v39  ;;  %2226 = vmatprep.subr.bf16.mxu1 %v2842_v50 }
 0x105   :  { %852 = vmatprep.subr.bf16.mxu0 %v2426_v40 }
 0x107   :  { %2227 = vmatpush3.bf16.msra.mxu1 %v2446_v57 }
 0x108   :  { %853 = vmatpush1.bf16.msra.mxu0 %v2424_v41  ;;  %2232 = vmatprep.subr.bf16.mxu1 %v2842_v50 }
 0x109   :  { %854 = vmatprep.subr.bf16.mxu0 %v2429_v42 }
 0x10c   :  { %855 = vmatpush1.bf16.msra.mxu0 %v2427_v43 }
 0x10d   :  { %856 = vmatprep.subr.bf16.mxu0 %v2432_v44 }
 0x110   :  { %857 = vmatpush1.bf16.msra.mxu0 %v2430_v45  ;;  %v3108_v45 = vsub.s32 0, %v3086_v63 }
 0x111   :  { %2102 = vmatprep.subr.msk.bf16.mxu0 %vm934_vm0, %v2436_v46 }
 0x112   :  { %v879_v53 = vrot.slane %v3094_v3, %v3108_v45 }
 0x113   :  { %859 = vmatmul.mubr.bf16.vlgmr.msra.gmra.mrb[4].mxu0 %v3056_v1  ;;  %v2469_v1 = vld [vmem:[#allocation14 + $0x44] ss:$16 sps:$4 sm:$0xff]  }
 0x114   :  { %954 = vmatpush1.bf16.msra.mxu0 %v936_v48  ;;  %985 = vmatprep.mubr.bf16.mxu0 %v2841_v18  ;;  %v3111_v48 = vsub.s32 1, %v3086_v63 }
 0x115   :  { %1563 = vmatprep.subr.bf16.mxu0 %v2457_v60 }
 0x116   :  { %v883_v54 = vrot.slane %v3094_v3, %v3111_v48 }
 0x11b   :  { %2103 = vmatmul.mubr.msk.bf16.vlgmr.msra.gmra.mrb[0].mxu0 %vm930_vm1, %v867_v24 }
 0x11c   :  { %1595 = vmatprep.mubr.bf16.mxu0 %v2841_v18  ;;  %1564 = vmatpush1.bf16.msra.mxu0 %v2455_v59 }
 0x11d   :  { %1565 = vmatprep.subr.bf16.mxu0 %v2463_v61 }
 0x120   :  { %1566 = vmatpush1.bf16.msra.mxu0 %v2461_v0 }
 0x121   :  { %1567 = vmatprep.subr.bf16.mxu0 %v2469_v1 }
 0x124   :  { %1568 = vmatpush1.bf16.msra.mxu0 %v2467_v5 }
 0x125   :  { %1569 = vmatprep.subr.bf16.mxu0 %v2475_v8 }
 0x128   :  { %1570 = vmatpush1.bf16.msra.mxu0 %v2473_v13 }
 0x129   :  { %1571 = vmatprep.subr.bf16.mxu0 %v2481_v14 }
 0x12c   :  { %1572 = vmatpush1.bf16.msra.mxu0 %v2479_v17  ;;  %v2447_v17 = vld [vmem:[#allocation12] sm:$0xff]  }
 0x12d   :  { %1573 = vmatprep.subr.bf16.mxu0 %v2487_v21  ;;  %v2448_v21 = vld [vmem:[#allocation12 + $0x8] sm:$0xff]  }
 0x130   :  { %1574 = vmatpush1.bf16.msra.mxu0 %v2485_v26  ;;  %v2460_v26 = vld [vmem:[#allocation14 + $0xc] ss:$16 sps:$4 sm:$0xff]  }
 0x131   :  { %1575 = vmatprep.subr.bf16.mxu0 %v2493_v27  ;;  %v2458_v27 = vld [vmem:[#allocation14 + $0x8] ss:$16 sps:$4 sm:$0xff]  }
 0x134   :  { %1576 = vmatpush1.bf16.msra.mxu0 %v2491_v28 }
 0x1b5   :  { %v1028_v6 = vpop.f32.mrb[0].mxu1 }
 0x1b6   :  { %v1030_v7 = vpop.f32.mrb[1].mxu1  ;;  %v1029_v15 = vadd.f32 %v1028_v6, %v887_v9 }
 0x1b7   :  { %v1032_v10 = vpop.f32.mrb[2].mxu1  ;;  %v1031_v16 = vadd.f32 %v1030_v7, %v891_v11 }
 0x1b8   :  { %v1033_v12 = vpop.f32.mrb[3].mxu1  ;;  %v2110_v22 = vmul.f32 -1.442695, %v1029_v15 }
 0x1b9   :  { %v2111_v24 = vmul.f32 -1.442695, %v1031_v16 }
 0x1ba   :  { %2551 = vpow2.f32 %v2110_v22  ;;  %v2451_v22 = vld [vmem:[#allocation12 + $0x20] sm:$0xff]  }
 0x1bb   :  { %2553 = vpow2.f32 %v2111_v24  ;;  %v2453_v24 = vld [vmem:[#allocation12 + $0x30] sm:$0xff]  }
 0x1bd   :  { %v1069_v19 = vpop.f32.mrb[4].mxu1 }
 0x1be   :  { %v1071_v20 = vpop.f32.mrb[5].mxu1  ;;  %v1070_v40 = vadd.f32 %v1069_v19, %v895_v36  ;;  %v2482_v36 = vld [vmem:[#allocation14 + $0x88] ss:$16 sps:$4 sm:$0xff]  }
 0x1bf   :  { %v1073_v23 = vpop.f32.mrb[6].mxu1  ;;  %v1072_v42 = vadd.f32 %v1071_v20, %v899_v37  ;;  %v2490_v37 = vld [vmem:[#allocation14 + $0xac] ss:$16 sps:$4 sm:$0xff]  }
 0x1c0   :  { %v1074_v25 = vpop.f32.mrb[7].mxu1  ;;  %v2452_v23 = vld [vmem:[#allocation12 + $0x28] sm:$0xff]  }
 0x1c1   :  { %v2454_v25 = vld [vmem:[#allocation12 + $0x38] sm:$0xff]  }
 0x1c4   :  { %v2552_v29 = vpop.eup %2551 }
 0x1c5   :  { %v2554_v30 = vpop.eup %2553  ;;  %v1098_v31 = vadd.f32 1.0, %v2552_v29  ;;  %v2466_v29 = vld [vmem:[#allocation14 + $0x2c] ss:$16 sps:$4 sm:$0xff]  }
 0x1c6   :  { %v1099_v32 = vadd.f32 1.0, %v2554_v30  ;;  %v2464_v30 = vld [vmem:[#allocation14 + $0x28] ss:$16 sps:$4 sm:$0xff]  }
 0x1c7   :  { %2555 = vrcp.f32 %v1098_v31  ;;  %v2472_v31 = vld [vmem:[#allocation14 + $0x4c] ss:$16 sps:$4 sm:$0xff]  }
 0x1c8   :  { %2557 = vrcp.f32 %v1099_v32  ;;  %v2470_v32 = vld [vmem:[#allocation14 + $0x48] ss:$16 sps:$4 sm:$0xff]  }
 0x1d1   :  { %v2556_v38 = vpop.eup %2555 }
 0x1d2   :  { %v2558_v39 = vpop.eup %2557 }
 0x1e6   :  { %v860_v41 = vpop.f32.mrb[4].mxu0 }
 0x1e7   :  { %v1104_v43 = vmul.f32 %v2556_v38, %v860_v41  ;;  %v862_v44 = vpop.f32.mrb[5].mxu0  ;;  %v2488_v38 = vld [vmem:[#allocation14 + $0xa8] ss:$16 sps:$4 sm:$0xff]   ;;  %v2499_v41 = vld [vmem:[#allocation14 + $0xe4] ss:$16 sps:$4 sm:$0xff]  }
 0x1e8   :  { %v1105_v46 = vmul.f32 %v2558_v39, %v862_v44  ;;  %v864_v47 = vpop.f32.mrb[6].mxu0  ;;  %v2496_v39 = vld [vmem:[#allocation14 + $0xcc] ss:$16 sps:$4 sm:$0xff]   ;;  %v2500_v44 = vld [vmem:[#allocation14 + $0xe8] ss:$16 sps:$4 sm:$0xff]   ;;  %1577 = vmatprep.subr.bf16.mxu0 %v2499_v41 }
 0x1e9   :  { %v1106_v49 = vadd.f32 %v1104_v43, %v1070_v40  ;;  %v865_v51 = vpop.f32.mrb[7].mxu0  ;;  %v2494_v40 = vld [vmem:[#allocation14 + $0xc8] ss:$16 sps:$4 sm:$0xff]   ;;  %v2497_v43 = vld [vmem:[#allocation14 + $0xe0] ss:$16 sps:$4 sm:$0xff]  }
 0x1ea   :  { %v1107_v52 = vadd.f32 %v1105_v46, %v1072_v42  ;;  %v2502_v42 = vld [vmem:[#allocation14 + $0xec] ss:$16 sps:$4 sm:$0xff]   ;;  %1578 = vmatpush1.bf16.msra.mxu0 %v2497_v43  ;;  %v2505_v46 = vld [vmem:[#allocation15 + $0x4] ss:$16 sps:$4 sm:$0xff]  }
 0x1eb   :  { %v2508_v47 = vld [vmem:[#allocation15 + $0xc] ss:$16 sps:$4 sm:$0xff]   ;;  %1860 = vmatprep.subr.bf16.mxu0 %v2505_v46 }
 0x1ee   :  { %v987_v55 = vpop.f32.mrb[0].mxu0 }
 0x1ef   :  { %v988_v56 = vadd.f32 %v987_v55, %v879_v53  ;;  %v989_v57 = vpop.f32.mrb[1].mxu0 }
 0x1f0   :  { %v990_v58 = vadd.f32 %v989_v57, %v883_v54  ;;  %v991_v59 = vpop.f32.mrb[2].mxu0  ;;  %v2503_v57 = vld [vmem:[#allocation15] ss:$16 sps:$4 sm:$0xff]  }
 0x1f1   :  { %v2108_v60 = vmul.f32 -1.442695, %v988_v56  ;;  %v992_v61 = vpop.f32.mrb[3].mxu0 }
 0x1f2   :  { %v2109_v0 = vmul.f32 -1.442695, %v990_v58  ;;  %v2506_v58 = vld [vmem:[#allocation15 + $0x8] ss:$16 sps:$4 sm:$0xff]   ;;  %v2514_v61 = vld [vmem:[#allocation15 + $0x2c] ss:$16 sps:$4 sm:$0xff]  }
 0x1f3   :  { %2559 = vpow2.f32 %v2108_v60  ;;  %v2511_v60 = vld [vmem:[#allocation15 + $0x24] ss:$16 sps:$4 sm:$0xff]  }
 0x1f4   :  { %2561 = vpow2.f32 %v2109_v0  ;;  %v2509_v0 = vld [vmem:[#allocation15 + $0x20] ss:$16 sps:$4 sm:$0xff]  }
 0x1fd   :  { %v2560_v63 = vpop.eup %2559 }
 0x1fe   :  { %v2562_v1 = vpop.eup %2561  ;;  %v1084_v5 = vadd.f32 1.0, %v2560_v63  ;;  %v2512_v63 = vld [vmem:[#allocation15 + $0x28] ss:$16 sps:$4 sm:$0xff]  }
 0x1ff   :  { %v1085_v6 = vadd.f32 1.0, %v2562_v1  ;;  %v2517_v1 = vld [vmem:[#allocation15 + $0x44] ss:$16 sps:$4 sm:$0xff]  }
 0x200   :  { %2563 = vrcp.f32 %v1084_v5  ;;  %v2520_v5 = vld [vmem:[#allocation15 + $0x4c] ss:$16 sps:$4 sm:$0xff]  }
 0x201   :  { %2565 = vrcp.f32 %v1085_v6  ;;  %v2515_v6 = vld [vmem:[#allocation15 + $0x40] ss:$16 sps:$4 sm:$0xff]  }
 0x202   :  { %2567 = vtanh.f32 %v1106_v49  ;;  %v2112_v49 = vld [vmem:[%s3199_s6] ss:$0 sm:$0xff] }
 0x203   :  { %2569 = vtanh.f32 %v1107_v52 }
 0x20a   :  { %v2564_v7 = vpop.eup %2563 }
 0x20b   :  { %v2566_v3 = vpop.eup %2565  ;;  %v1112_v8 = vsub.f32 1.0, %v2564_v7  ;;  %v1110_v12 = vmul.f32 %v2564_v7, %v3052_v62  ;;  %v2449_v62 = vld [vmem:[#allocation12 + $0x10] sm:$0xff]   ;;  %v2518_v7 = vld [vmem:[#allocation15 + $0x48] ss:$16 sps:$4 sm:$0xff]  }
 0x20c   :  { %v2568_v9 = vpop.eup %2567  ;;  %v1113_v10 = vsub.f32 1.0, %v2566_v3  ;;  %v1111_v14 = vmul.f32 %v2566_v3, %v3044_v35  ;;  %v2450_v35 = vld [vmem:[#allocation12 + $0x18] sm:$0xff]   ;;  %v2523_v3 = vld [vmem:[#allocation15 + $0x64] ss:$16 sps:$4 sm:$0xff]  }
 0x20d   :  { %v2570_v11 = vpop.eup %2569  ;;  %v1114_v13 = vmul.f32 %v2568_v9, %v1112_v8  ;;  %v2526_v8 = vld [vmem:[#allocation15 + $0x6c] ss:$16 sps:$4 sm:$0xff]   ;;  %v2521_v9 = vld [vmem:[#allocation15 + $0x60] ss:$16 sps:$4 sm:$0xff]  }
 0x20e   :  { %v1115_v15 = vmul.f32 %v2570_v11, %v1113_v10  ;;  %v2524_v10 = vld [vmem:[#allocation15 + $0x68] ss:$16 sps:$4 sm:$0xff]   ;;  %v2529_v11 = vld [vmem:[#allocation15 + $0x84] ss:$16 sps:$4 sm:$0xff]  }
 0x20f   :  { %v1116_v16 = vadd.f32 %v1114_v13, %v1110_v12  ;;  %v2532_v12 = vld [vmem:[#allocation15 + $0x8c] ss:$16 sps:$4 sm:$0xff]   ;;  %v2527_v13 = vld [vmem:[#allocation15 + $0x80] ss:$16 sps:$4 sm:$0xff]  }
 0x210   :  { %v1117_v19 = vadd.f32 %v1115_v15, %v1111_v14  ;;  %v2535_v14 = vld [vmem:[#allocation15 + $0xa4] ss:$16 sps:$4 sm:$0xff]   ;;  %v2538_v15 = vld [vmem:[#allocation15 + $0xac] ss:$16 sps:$4 sm:$0xff]  }
 0x211   :  { %v1122_v20 = vpack.c.bf16 %v1116_v16, %v1116_v16  ;;  %1120 = vst [vmem:[#allocation20] sm:$0xff] %v1116_v16  ;;  %v2533_v16 = vld [vmem:[#allocation15 + $0xa0] ss:$16 sps:$4 sm:$0xff]  }
 0x212   :  { %1121 = vst [vmem:[#allocation20 + $0x8] sm:$0xff] %v1117_v19  ;;  %v1123_v28 = vpack.c.bf16 %v1117_v19, %v1117_v19  ;;  %v2541_v19 = vld [vmem:[#allocation15 + $0xc4] ss:$16 sps:$4 sm:$0xff]  }
 0x213   :  { %2229 = vmatmul.mubr.bf16.vlgmr.msra.gmra.mrb[8].mxu1 %v1122_v20  ;;  %v2544_v20 = vld [vmem:[#allocation15 + $0xcc] ss:$16 sps:$4 sm:$0xff]  }
 0x214   :  { %2233 = vmatpush3.bf16.msra.mxu1 %v2447_v17  ;;  %2248 = vmatprep.mubr.msk.bf16.mxu1 %vm2843_vm2, %v2842_v50  ;;  %v2536_v17 = vld [vmem:[#allocation15 + $0xa8] ss:$16 sps:$4 sm:$0xff]  }
 0x215   :  { %2234 = vmatprep.subr.bf16.mxu1 %v2842_v50 }
 0x218   :  { %2235 = vmatpush3.bf16.msra.mxu1 %v2448_v21  ;;  %v2539_v21 = vld [vmem:[#allocation15 + $0xc0] ss:$16 sps:$4 sm:$0xff]  }
 0x219   :  { %2236 = vmatprep.subr.bf16.mxu1 %v2842_v50 }
 0x21c   :  { %2237 = vmatpush3.bf16.msra.mxu1 %v2449_v62  ;;  %v2542_v62 = vld [vmem:[#allocation15 + $0xc8] ss:$16 sps:$4 sm:$0xff]  }
 0x21d   :  { %2238 = vmatprep.subr.bf16.mxu1 %v2842_v50 }
 0x220   :  { %2239 = vmatpush3.bf16.msra.mxu1 %v2450_v35  ;;  %v2547_v35 = vld [vmem:[#allocation15 + $0xe4] ss:$16 sps:$4 sm:$0xff]  }
 0x221   :  { %2240 = vmatprep.subr.bf16.mxu1 %v2842_v50 }
 0x224   :  { %2241 = vmatpush3.bf16.msra.mxu1 %v2451_v22  ;;  %v2550_v22 = vld [vmem:[#allocation15 + $0xec] ss:$16 sps:$4 sm:$0xff]  }
 0x225   :  { %2242 = vmatprep.subr.bf16.mxu1 %v2842_v50 }
 0x228   :  { %2243 = vmatpush3.bf16.msra.mxu1 %v2452_v23  ;;  %v2121_v23 = vld [vmem:[%s3201_s8] ss:$0 sm:$0xff]  ;;  %s2844_s8 = smov [#allocation17]  }
 0x229   :  { %2244 = vmatprep.subr.bf16.mxu1 %v2842_v50  ;;  %s1955_s28 = sshll.u32 %s2844_s8, 4  ;;  %s1956_s28 = int_to_ptr.vmem [resolvable:$true] %s1955_s28 }
 0x22a   :  { %p2752_p9 = scmp.lt.s32.totalorder %s1956_s28, %s1956_s28 }
 0x22c   :  { %2245 = vmatpush3.bf16.msra.mxu1 %v2453_v24 }
 0x22d   :  { %2246 = vmatprep.subr.bf16.mxu1 %v2842_v50  ;;  %v2484_v50 = vld [vmem:[#allocation14 + $0x8c] ss:$16 sps:$4 sm:$0xff]  }
 0x230   :  { %2247 = vmatpush3.bf16.msra.mxu1 %v2454_v25  ;;  %v2545_v25 = vld [vmem:[#allocation15 + $0xe0] ss:$16 sps:$4 sm:$0xff]  }
 0x231   :  { %1604 = vmatprep.subr.bf16.mxu1 %v2460_v26  ;;  %v2548_v26 = vld [vmem:[#allocation15 + $0xe8] ss:$16 sps:$4 sm:$0xff]  }
 0x233   :  { %2249 = vmatmul.mubr.bf16.vlgmr.msra.gmra.mrb[12].mxu1 %v1123_v28 }
 0x234   :  { %1605 = vmatpush1.bf16.msra.mxu1 %v2458_v27  ;;  %1636 = vmatprep.mubr.bf16.mxu1 %v2841_v18 }
 0x235   :  { %1606 = vmatprep.subr.bf16.mxu1 %v2466_v29 }
 0x238   :  { %1607 = vmatpush1.bf16.msra.mxu1 %v2464_v30 }
 0x239   :  { %1608 = vmatprep.subr.bf16.mxu1 %v2472_v31 }
 0x23c   :  { %1609 = vmatpush1.bf16.msra.mxu1 %v2470_v32 }
 0x23d   :  { %1610 = vmatprep.subr.bf16.mxu1 %v2478_v33  ;;  %v1381_v33 = vld [vmem:[%s3203_s10] sm:$0xf]  ;;  %s2747_s10 = scalar_lea.vmem %s1956_s28, 512 }
 0x23e   :  { %p2748_p8 = scmp.ne.s32.totalorder %s1956_s28, %s2747_s10  ;;  %p2753_p10 = scmp.lt.s32.totalorder %s2747_s10, %s2747_s10 }
 0x240   :  { %1611 = vmatpush1.bf16.msra.mxu1 %v2476_v34  ;;  %v1386_v34 = vrot.slane %v1381_v33, %v3108_v45  ;;  %p2754_p11 = por %p2753_p10, %p2752_p9 }
 0x241   :  { %1612 = vmatprep.subr.bf16.mxu1 %v2484_v50  ;;  %v1394_v50 = vrot.slane %v1381_v33, %v3089_v2 }
 0x242   :  { %p2755_p12 = pnand %p2754_p11, %p2748_p8 }
 0x244   :  { %1613 = vmatpush1.bf16.msra.mxu1 %v2482_v36  ;;  %v1390_v36 = vrot.slane %v1381_v33, %v3111_v48 }
 0x245   :  { %1614 = vmatprep.subr.bf16.mxu1 %v2490_v37  ;;  %v1398_v37 = vrot.slane %v1381_v33, %v3097_v4 }
 0x248   :  { %1615 = vmatpush1.bf16.msra.mxu1 %v2488_v38 }
 0x249   :  { %1616 = vmatprep.subr.bf16.mxu1 %v2496_v39 }
 0x24c   :  { %1617 = vmatpush1.bf16.msra.mxu1 %v2494_v40 }
 0x24d   :  { %1618 = vmatprep.subr.bf16.mxu1 %v2502_v42 }
 0x250   :  { %1619 = vmatpush1.bf16.msra.mxu1 %v2500_v44 }
 0x251   :  { %1901 = vmatprep.subr.bf16.mxu1 %v2508_v47 }
 0x2e6   :  { %v1229_v51 = vpop.f32.mrb[8].mxu1 }
 0x2e7   :  { %v1230_v52 = vadd.f32 %v2112_v49, %v1229_v51  ;;  %v2230_v53 = vpop.f32.mrb[9].mxu1 }
 0x2e8   :  { %v1232_v54 = vpop.f32.mrb[10].mxu1 }
 0x2e9   :  { %v1235_v55 = vmax.f32 %v1230_v52, 0.0  ;;  %v2231_v56 = vpop.f32.mrb[11].mxu1 }
 0x2eb   :  { %v1348_v59 = vpack.c.bf16 %v1235_v55, %v1235_v55 }
 0x2ed   :  { %1596 = vmatmul.mubr.bf16.vlgmr.msra.gmra.mrb[8].mxu0 %v1348_v59  ;;  %1637 = vmatmul.mubr.bf16.vlgmr.msra.gmra.mrb[16].mxu1 %v1348_v59 }
 0x2ee   :  { %1861 = vmatpush1.bf16.msra.mxu0 %v2503_v57  ;;  %1902 = vmatpush1.bf16.msra.mxu1 %v2506_v58 }
 0x2ef   :  { %1862 = vmatprep.subr.bf16.mxu0 %v2511_v60  ;;  %1903 = vmatprep.subr.bf16.mxu1 %v2514_v61 }
 0x2f0   :  { %1892 = vmatprep.mubr.bf16.mxu0 %v2841_v18  ;;  %1933 = vmatprep.mubr.bf16.mxu1 %v2841_v18  ;;  %v2530_v18 = vld [vmem:[#allocation15 + $0x88] ss:$16 sps:$4 sm:$0xff]  }
 0x2f2   :  { %1863 = vmatpush1.bf16.msra.mxu0 %v2509_v0  ;;  %1904 = vmatpush1.bf16.msra.mxu1 %v2512_v63 }
 0x2f3   :  { %1864 = vmatprep.subr.bf16.mxu0 %v2517_v1  ;;  %1905 = vmatprep.subr.bf16.mxu1 %v2520_v5 }
 0x2f6   :  { %1865 = vmatpush1.bf16.msra.mxu0 %v2515_v6  ;;  %1906 = vmatpush1.bf16.msra.mxu1 %v2518_v7 }
 0x2f7   :  { %1866 = vmatprep.subr.bf16.mxu0 %v2523_v3  ;;  %1907 = vmatprep.subr.bf16.mxu1 %v2526_v8 }
 0x2fa   :  { %1867 = vmatpush1.bf16.msra.mxu0 %v2521_v9  ;;  %1908 = vmatpush1.bf16.msra.mxu1 %v2524_v10 }
 0x2fb   :  { %1868 = vmatprep.subr.bf16.mxu0 %v2529_v11  ;;  %1909 = vmatprep.subr.bf16.mxu1 %v2532_v12 }
 0x2fe   :  { %1869 = vmatpush1.bf16.msra.mxu0 %v2527_v13  ;;  %1910 = vmatpush1.bf16.msra.mxu1 %v2530_v18 }
 0x2ff   :  { %1870 = vmatprep.subr.bf16.mxu0 %v2535_v14  ;;  %1911 = vmatprep.subr.bf16.mxu1 %v2538_v15 }
 0x302   :  { %1871 = vmatpush1.bf16.msra.mxu0 %v2533_v16  ;;  %1912 = vmatpush1.bf16.msra.mxu1 %v2536_v17 }
 0x303   :  { %1872 = vmatprep.subr.bf16.mxu0 %v2541_v19  ;;  %1913 = vmatprep.subr.bf16.mxu1 %v2544_v20 }
 0x306   :  { %v1341_v24 = vpop.f32.mrb[12].mxu1  ;;  %1873 = vmatpush1.bf16.msra.mxu0 %v2539_v21  ;;  %1914 = vmatpush1.bf16.msra.mxu1 %v2542_v62 }
 0x307   :  { %v1342_v27 = vadd.f32 %v2121_v23, %v1341_v24  ;;  %v2250_v28 = vpop.f32.mrb[13].mxu1  ;;  %1874 = vmatprep.subr.bf16.mxu0 %v2547_v35  ;;  %1915 = vmatprep.subr.bf16.mxu1 %v2550_v22 }
 0x308   :  { %v1344_v29 = vpop.f32.mrb[14].mxu1 }
 0x309   :  { %v1347_v30 = vmax.f32 %v1342_v27, 0.0  ;;  %v2251_v31 = vpop.f32.mrb[15].mxu1 }
 0x30a   :  { %1875 = vmatpush1.bf16.msra.mxu0 %v2545_v25  ;;  %1916 = vmatpush1.bf16.msra.mxu1 %v2548_v26 }
 0x30b   :  { %v1645_v32 = vpack.c.bf16 %v1347_v30, %v1347_v30 }
 0x30d   :  { %1893 = vmatmul.mubr.bf16.vlgmr.msra.gmra.mrb[12].mxu0 %v1645_v32  ;;  %1934 = vmatmul.mubr.bf16.vlgmr.msra.gmra.mrb[20].mxu1 %v1645_v32 }
 0x3c0   :  { %v1597_v38 = vpop.f32.mrb[8].mxu0  ;;  %v1638_v39 = vpop.f32.mrb[16].mxu1 }
 0x3c1   :  { %v1598_v40 = vadd.f32 %v1597_v38, %v1386_v34  ;;  %v1639_v41 = vadd.f32 %v1638_v39, %v1394_v50  ;;  %v1599_v42 = vpop.f32.mrb[9].mxu0  ;;  %v1640_v43 = vpop.f32.mrb[17].mxu1 }
 0x3c2   :  { %v1600_v44 = vadd.f32 %v1599_v42, %v1390_v36  ;;  %v1641_v46 = vadd.f32 %v1640_v43, %v1398_v37  ;;  %v1601_v47 = vpop.f32.mrb[10].mxu0  ;;  %v1642_v49 = vpop.f32.mrb[18].mxu1 }
 0x3c3   :  { %1942 = vst [vmem:[#allocation17] sm:$0xff] %v1598_v40  ;;  %1946 = vst [vmem:[#allocation17 + $0x10] sm:$0xff] %v1639_v41  ;;  %v1602_v51 = vpop.f32.mrb[11].mxu0  ;;  %v1643_v52 = vpop.f32.mrb[19].mxu1 }
 0x3c4   :  { %1944 = vst [vmem:[#allocation17 + $0x8] sm:$0xff] %v1600_v44  ;;  %1948 = vst [vmem:[#allocation17 + $0x18] sm:$0xff] %v1641_v46 }
 0x3c5   :  { %2758 = shalt.err (!%p2755_p12)
}
 0x3c6   :  { %s2759_s26 = scalar_lea.hbm %s3206_s13, 512 }
 0x3c7   :  { %p2760_p13 = scmp.ne.s32.totalorder %s3206_s13, %s2759_s26  ;;  %p2763_p0 = scmp.lt.u32.totalorder %s2759_s26, %s3206_s13 }
 0x3c9   :  { %p2765_p1 = pnand %p2763_p0, %p2760_p13 }
 0x3cb   :  { %2768 = shalt.err (!%p2765_p1)
}
 0x3cc   :  { %s2845_s22 = smov 128   ;;  %s2846_s23 = smov 8   ;;  %v1678_v53 = vld [vmem:[%s3205_s12] sm:$0xf] }
 0x3cd   :  { %1961 = dma.vmem_to_hbm [thread:$0]  %s1956_s28, 512, %s3206_s13, [#allocation5], %s2845_s22, %s2845_s22, %s2846_s23   ;;  %v1683_v54 = vrot.slane %v1678_v53, %v3108_v45  ;;  %v1691_v55 = vrot.slane %v1678_v53, %v3089_v2  ;;  %v1687_v56 = vrot.slane %v1678_v53, %v3111_v48  ;;  %v1695_v57 = vrot.slane %v1678_v53, %v3097_v4 }
 0x3ce   :  { %s2847_s25 = smov [#allocation18]   ;;  %s2848_s27 = smov [#allocation20]  }
 0x3cf   :  { %s1967_s9 = sshll.u32 %s2847_s25, 4  ;;  %s1980_s11 = sshll.u32 %s2848_s27, 4  ;;  %s1968_s9 = int_to_ptr.vmem [resolvable:$true] %s1967_s9  ;;  %s1981_s11 = int_to_ptr.vmem [resolvable:$true] %s1980_s11 }
 0x3d0   :  { %s2769_s12 = scalar_lea.vmem %s1968_s9, 512  ;;  %p2774_p3 = scmp.lt.s32.totalorder %s1968_s9, %s1968_s9 }
 0x3d1   :  { %p2770_p2 = scmp.ne.s32.totalorder %s1968_s9, %s2769_s12  ;;  %p2775_p4 = scmp.lt.s32.totalorder %s2769_s12, %s2769_s12 }
 0x3d3   :  { %p2776_p5 = por %p2775_p4, %p2774_p3 }
 0x3d5   :  { %p2777_p6 = pnand %p2776_p5, %p2770_p2 }
 0x3e0   :  { %v1894_v58 = vpop.f32.mrb[12].mxu0  ;;  %v1935_v59 = vpop.f32.mrb[20].mxu1 }
 0x3e1   :  { %v1895_v60 = vadd.f32 %v1894_v58, %v1683_v54  ;;  %v1936_v61 = vadd.f32 %v1935_v59, %v1691_v55  ;;  %v1896_v0 = vpop.f32.mrb[13].mxu0  ;;  %v1937_v63 = vpop.f32.mrb[21].mxu1 }
 0x3e2   :  { %v1897_v1 = vadd.f32 %v1896_v0, %v1687_v56  ;;  %v1938_v5 = vadd.f32 %v1937_v63, %v1695_v57  ;;  %v1898_v6 = vpop.f32.mrb[14].mxu0  ;;  %v1939_v45 = vpop.f32.mrb[22].mxu1 }
 0x3e3   :  { %1943 = vst [vmem:[#allocation18] sm:$0xff] %v1895_v60  ;;  %1947 = vst [vmem:[#allocation18 + $0x10] sm:$0xff] %v1936_v61  ;;  %v1899_v2 = vpop.f32.mrb[15].mxu0  ;;  %v1940_v48 = vpop.f32.mrb[23].mxu1 }
 0x3e4   :  { %1945 = vst [vmem:[#allocation18 + $0x8] sm:$0xff] %v1897_v1  ;;  %1949 = vst [vmem:[#allocation18 + $0x18] sm:$0xff] %v1938_v5 }
 0x3e5   :  { %2780 = shalt.err (!%p2777_p6)
}
 0x3e6   :  { %s2781_s4 = scalar_lea.hbm %s3207_s14, 512 }
 0x3e7   :  { %p2782_p7 = scmp.ne.s32.totalorder %s3207_s14, %s2781_s4  ;;  %p2785_p8 = scmp.lt.u32.totalorder %s2781_s4, %s3207_s14 }
 0x3e9   :  { %p2787_p9 = pnand %p2785_p8, %p2782_p7 }
 0x3eb   :  { %2790 = shalt.err (!%p2787_p9)
}
 0x3ec   :  { %1973 = dma.vmem_to_hbm [thread:$0]  %s1968_s9, 512, %s3207_s14, [#allocation19], %s2845_s22, %s2845_s22, %s2846_s23  }
 0x3ed   :  { %s2791_s28 = scalar_lea.vmem %s1981_s11, 256  ;;  %p2796_p11 = scmp.lt.s32.totalorder %s1981_s11, %s1981_s11 }
 0x3ee   :  { %p2792_p10 = scmp.ne.s32.totalorder %s1981_s11, %s2791_s28  ;;  %p2797_p12 = scmp.lt.s32.totalorder %s2791_s28, %s2791_s28 }
 0x3f0   :  { %p2798_p13 = por %p2797_p12, %p2796_p11 }
 0x3f2   :  { %p2799_p0 = pnand %p2798_p13, %p2792_p10 }
 0x3f4   :  { %2802 = shalt.err (!%p2799_p0)
}
 0x3f5   :  { %s2803_s16 = scalar_lea.hbm %s3208_s15, 256 }
 0x3f6   :  { %p2804_p1 = scmp.ne.s32.totalorder %s3208_s15, %s2803_s16  ;;  %p2807_p2 = scmp.lt.u32.totalorder %s2803_s16, %s3208_s15 }
 0x3f8   :  { %p2809_p3 = pnand %p2807_p2, %p2804_p1 }
 0x3fa   :  { %2812 = shalt.err (!%p2809_p3)
}
 0x3fb   :  { %1983 = dma.vmem_to_hbm [thread:$0]  %s1981_s11, 256, %s3208_s15, [#allocation19]  }
 0x3fc   :  { %2823 = dma.done.wait [#allocation5], 512  }
 0x3fd   :  { %2824 = vsyncadd [#allocation5], 4294966784 }
 0x3fe   :  { %2825 = dma.done.wait [#allocation19], 768  }
 0x3ff   :  { %2826 = vsyncadd [#allocation19], 4294966528 }
 0x400   :  { %1993 = vsyncpa [#allocation4], 1 }
 0x401   :  { %1994 = vsyncpa [#allocation7], 1 }
 0x402   :  { %1995 = vsyncpa [#allocation10], 1 }
 0x403   :  { %1996 = vsyncpa [#allocation13], 1 }
 0x404   :  { %1997 = vsyncpa [#allocation16], 1 }
 0x405   :  { %1998 = vsyncpa [#allocation5], 1 }
 0x406   :  { %1999 = vsyncpa [#allocation19], 1 }

</bundles_post_ra>
